<compile_context>
chip_gen: v6e
topology: v6e:2x2x1
jax: 0.10.0
libtpu: 0.0.40
codegen_flags: <defaults>
</compile_context>

<pallas_src>
import math
import functools

import jax
import jax.numpy as jnp
from jax.experimental import pallas as pl
from jax.experimental.pallas import tpu as pltpu


def _layernorm(z, g, b, eps=1e-5):
    mu = jnp.mean(z, axis=-1, keepdims=True)
    var = jnp.mean((z - mu) ** 2, axis=-1, keepdims=True)
    return (z - mu) * jax.lax.rsqrt(var + eps) * g + b


def residual_block_kernel(mask_ref, x_ref,
                          ln1g_ref, ln1b_ref,
                          wq_ref, wk_ref, wv_ref,
                          bq_ref, bk_ref, bv_ref,
                          wo_ref, bo_ref,
                          ln2g_ref, ln2b_ref,
                          w1_ref, b1_ref, w2_ref, b2_ref,
                          o_ref, *, n_head, head_dim, seq_len, batch_tile, n_mask):
    H, hd, L, Bt, N = n_head, head_dim, seq_len, batch_tile, n_mask
    bf16 = jnp.bfloat16

    x = x_ref[...]                                            # (Bt*L, D) fp32

    # ---- ln_1 + QKV projection (bf16 operands, fp32 accumulation) ----
    y = _layernorm(x, ln1g_ref[0], ln1b_ref[0]).astype(bf16)
    q = jnp.dot(y, wq_ref[...], preferred_element_type=jnp.float32) + bq_ref[0]
    k = jnp.dot(y, wk_ref[...], preferred_element_type=jnp.float32) + bk_ref[0]
    v = jnp.dot(y, wv_ref[...], preferred_element_type=jnp.float32) + bv_ref[0]
    q = q * (1.0 / math.sqrt(hd))

    # ---- multi-head self-attention, batched over heads per batch element ----
    tile = pl.program_id(0)
    ctx_rows = []
    for b in range(Bt):
        rows = slice(b * L, (b + 1) * L)
        qh = jnp.stack([q[rows, h * hd:(h + 1) * hd] for h in range(H)], axis=0).astype(bf16)
        kh = jnp.stack([k[rows, h * hd:(h + 1) * hd] for h in range(H)], axis=0).astype(bf16)
        vh = jnp.stack([v[rows, h * hd:(h + 1) * hd] for h in range(H)], axis=0).astype(bf16)

        # torch `attn_mask.repeat(n_head,1,1)` semantics: the mask used for
        # (global batch gb, head h) is attn_mask[(gb*H + h) % N].
        m_b = jnp.stack(
            [mask_ref[(tile * (Bt * H) + b * H + h) % N] for h in range(H)], axis=0)

        s = jnp.einsum('hld,hmd->hlm', qh, kh,
                       preferred_element_type=jnp.float32) + m_b       # (H, L, L) fp32
        s = s - jnp.max(s, axis=-1, keepdims=True)
        p = jnp.exp(s)
        denom = jnp.sum(p, axis=-1, keepdims=True)
        p = p * pl.reciprocal(denom, approx=True)
        ctx = jnp.einsum('hlm,hmd->hld', p.astype(bf16), vh,
                         preferred_element_type=jnp.float32)           # (H, L, hd)
        ctx_rows.append(jnp.concatenate([ctx[h] for h in range(H)], axis=-1))  # (L, D)
    ctx_all = jnp.concatenate(ctx_rows, axis=0).astype(bf16)           # (Bt*L, D)

    attn_out = jnp.dot(ctx_all, wo_ref[...], preferred_element_type=jnp.float32) + bo_ref[0]
    x = x + attn_out

    # ---- ln_2 + MLP (c_fc -> QuickGELU -> c_proj) ----
    y2 = _layernorm(x, ln2g_ref[0], ln2b_ref[0]).astype(bf16)
    h1 = jnp.dot(y2, w1_ref[...], preferred_element_type=jnp.float32) + b1_ref[0]
    h1 = h1 * jax.nn.sigmoid(1.702 * h1)                               # QuickGELU (fp32)
    mlp_out = jnp.dot(h1.astype(bf16), w2_ref[...],
                      preferred_element_type=jnp.float32) + b2_ref[0]

    o_ref[...] = x + mlp_out


def _pick_batch_tile(B, L, target_rows=512):
    """Largest divisor Bt of B whose (Bt*L, D) block fits the row target and tiles cleanly."""
    candidates = [bt for bt in range(1, B + 1)
                  if B % bt == 0 and (bt == B or (bt * L) % 8 == 0)]
    fitting = [bt for bt in candidates if bt * L <= max(L, target_rows)]
    return max(fitting) if fitting else min(candidates)


def _vmem_limit_bytes(Bt, L, D, Dff, N):
    rows = Bt * L
    weights = (4 * D * D + 2 * D * Dff) * 2                   # bf16
    io_blocks = 2 * rows * D * 4                              # x block + out block (fp32)
    mask = N * L * L * 4
    working = rows * (5 * D + Dff) * 4                        # q/k/v, h1, residual temps
    est = 2 * (weights + io_blocks + mask) + 2 * working + (4 << 20)
    return int(min(64 << 20, max(32 << 20, est)))


def run_residual_block(x2d, mask_nll, p, *, n_head, batch, seq_len, batch_tile,
                       vmem_limit, cost):
    BL, D = x2d.shape
    L, Bt = seq_len, batch_tile
    N = mask_nll.shape[0]
    H = n_head
    hd = D // H
    Dff = p["w1_t"].shape[1]

    full = lambda shape: pl.BlockSpec(shape, lambda i: (0,) * len(shape))

    kernel = functools.partial(residual_block_kernel, n_head=H, head_dim=hd,
                               seq_len=L, batch_tile=Bt, n_mask=N)

    return pl.pallas_call(
        kernel,
        out_shape=jax.ShapeDtypeStruct((BL, D), jnp.float32),
        grid_spec=pltpu.PrefetchScalarGridSpec(
            num_scalar_prefetch=0,
            grid=(batch // Bt,),
            in_specs=[
                full((N, L, L)),                                  # distinct masks (fp32)
                pl.BlockSpec((Bt * L, D), lambda i: (i, 0)),      # x row-slab
                full((1, D)), full((1, D)),                       # ln1 g/b
                full((D, D)), full((D, D)), full((D, D)),         # Wq,Wk,Wv (bf16, pre-T)
                full((1, D)), full((1, D)), full((1, D)),         # bq,bk,bv (fp32)
                full((D, D)), full((1, D)),                       # Wo (bf16, pre-T), bo
                full((1, D)), full((1, D)),                       # ln2 g/b
                full((D, Dff)), full((1, Dff)),                   # W1 (bf16, pre-T), b1
                full((Dff, D)), full((1, D)),                     # W2 (bf16, pre-T), b2
            ],
            out_specs=pl.BlockSpec((Bt * L, D), lambda i: (i, 0)),
        ),
        compiler_params=pltpu.CompilerParams(
            dimension_semantics=("parallel",),
            vmem_limit_bytes=vmem_limit),
        cost_estimate=cost,
    )(mask_nll, x2d,
      p["ln1_g"], p["ln1_b"],
      p["wq_t"], p["wk_t"], p["wv_t"],
      p["bq"], p["bk"], p["bv"],
      p["wo_t"], p["bo"],
      p["ln2_g"], p["ln2_b"],
      p["w1_t"], p["b1"], p["w2_t"], p["b2"])


def transformer_forward(x_lnd, attn_mask, params, n_head):
    """x_lnd: (L, N, D) seq-first (torch layout); attn_mask: (N, L, L) additive float.
    Returns (L, N, D)."""
    L, N, D = x_lnd.shape
    H = n_head
    Dff = params[0]["w1_t"].shape[1]
    Bt = _pick_batch_tile(N, L)

    x = jnp.transpose(x_lnd, (1, 0, 2)).astype(jnp.float32).reshape(N * L, D)
    mask = attn_mask.astype(jnp.float32)

    bf = jnp.bfloat16
    kparams = [dict(
        ln1_g=p["ln1_g"], ln1_b=p["ln1_b"],
        wq_t=p["wq_t"].astype(bf), wk_t=p["wk_t"].astype(bf), wv_t=p["wv_t"].astype(bf),
        bq=p["bq"], bk=p["bk"], bv=p["bv"],
        wo_t=p["wo_t"].astype(bf), bo=p["bo"],
        ln2_g=p["ln2_g"], ln2_b=p["ln2_b"],
        w1_t=p["w1_t"].astype(bf), b1=p["b1"],
        w2_t=p["w2_t"].astype(bf), b2=p["b2"],
    ) for p in params]

    cost = pl.CostEstimate(
        flops=int(2 * N * L * (4 * D * D + 2 * D * Dff + 2 * L * D)),
        transcendentals=int(N * H * L * L + N * L * Dff),
        bytes_accessed=int(2 * N * L * D * 4 + (4 * D * D + 2 * D * Dff) * 2
                           + N * L * L * 4 + (7 * D + Dff) * 4),
    )
    vmem_limit = _vmem_limit_bytes(Bt, L, D, Dff, N)

    for p in kparams:
        x = run_residual_block(x, mask, p, n_head=H, batch=N, seq_len=L,
                               batch_tile=Bt, vmem_limit=vmem_limit, cost=cost)
    return jnp.transpose(x.reshape(N, L, D), (1, 0, 2))


# ---------------- deterministic parameter construction ----------------

def init_params(key, width, layers, heads):
    D = width
    Dff = 4 * D
    params = []
    for _ in range(layers):
        key, *ks = jax.random.split(key, 8)
        in_proj_w = 0.02 * jax.random.normal(ks[0], (3 * D, D), jnp.float32)
        in_proj_b = 0.02 * jax.random.normal(ks[1], (3 * D,), jnp.float32)
        out_proj_w = 0.02 * jax.random.normal(ks[2], (D, D), jnp.float32)
        out_proj_b = 0.02 * jax.random.normal(ks[3], (D,), jnp.float32)
        w_fc = 0.02 * jax.random.normal(ks[4], (Dff, D), jnp.float32)
        b_fc = 0.02 * jax.random.normal(ks[5], (Dff,), jnp.float32)
        w_proj = 0.02 * jax.random.normal(ks[6], (D, Dff), jnp.float32)
        b_proj = jnp.zeros((D,), jnp.float32)

        wq, wk, wv = in_proj_w[:D], in_proj_w[D:2 * D], in_proj_w[2 * D:]
        bq, bk, bv = in_proj_b[:D], in_proj_b[D:2 * D], in_proj_b[2 * D:]

        params.append(dict(
            ln1_g=jnp.ones((1, D), jnp.float32), ln1_b=jnp.zeros((1, D), jnp.float32),
            wq_t=wq.T, wk_t=wk.T, wv_t=wv.T,
            bq=bq.reshape(1, D), bk=bk.reshape(1, D), bv=bv.reshape(1, D),
            wo_t=out_proj_w.T, bo=out_proj_b.reshape(1, D),
            ln2_g=jnp.ones((1, D), jnp.float32), ln2_b=jnp.zeros((1, D), jnp.float32),
            w1_t=w_fc.T, b1=b_fc.reshape(1, Dff),
            w2_t=w_proj.T, b2=b_proj.reshape(1, D),
        ))
    return params


# -------- pure-JAX reference with matching bf16 matmul boundaries --------

def reference_forward(x_lnd, attn_mask, params, n_head):
    L, N, D = x_lnd.shape
    H = n_head
    hd = D // H
    bf = jnp.bfloat16
    x = jnp.transpose(x_lnd, (1, 0, 2)).astype(jnp.float32)          # (N, L, D)
    idx = (jnp.arange(N)[:, None] * H + jnp.arange(H)[None, :]) % N
    mask_bh = attn_mask.astype(jnp.float32)[idx]                      # (N, H, L, L)

    def ln(z, g, b):
        mu = jnp.mean(z, -1, keepdims=True)
        var = jnp.mean((z - mu) ** 2, -1, keepdims=True)
        return (z - mu) * jax.lax.rsqrt(var + 1e-5) * g[0] + b[0]

    for p in params:
        y = ln(x, p["ln1_g"], p["ln1_b"]).astype(bf)
        q = jnp.dot(y, p["wq_t"].astype(bf), preferred_element_type=jnp.float32) + p["bq"][0]
        k = jnp.dot(y, p["wk_t"].astype(bf), preferred_element_type=jnp.float32) + p["bk"][0]
        v = jnp.dot(y, p["wv_t"].astype(bf), preferred_element_type=jnp.float32) + p["bv"][0]
        q = q * (1.0 / math.sqrt(hd))
        qh = q.reshape(N, L, H, hd).transpose(0, 2, 1, 3).astype(bf)
        kh = k.reshape(N, L, H, hd).transpose(0, 2, 1, 3).astype(bf)
        vh = v.reshape(N, L, H, hd).transpose(0, 2, 1, 3).astype(bf)
        s = jnp.einsum('bhld,bhmd->bhlm', qh, kh,
                       preferred_element_type=jnp.float32) + mask_bh
        s = s - jnp.max(s, axis=-1, keepdims=True)
        pr = jnp.exp(s)
        pr = pr / jnp.sum(pr, axis=-1, keepdims=True)
        ctx = jnp.einsum('bhlm,bhmd->bhld', pr.astype(bf), vh,
                         preferred_element_type=jnp.float32)
        ctx = ctx.transpose(0, 2, 1, 3).reshape(N, L, D).astype(bf)
        x = x + (jnp.dot(ctx, p["wo_t"].astype(bf),
                         preferred_element_type=jnp.float32) + p["bo"][0])
        y2 = ln(x, p["ln2_g"], p["ln2_b"]).astype(bf)
        h1 = jnp.dot(y2, p["w1_t"].astype(bf),
                     preferred_element_type=jnp.float32) + p["b1"][0]
        h1 = h1 * jax.nn.sigmoid(1.702 * h1)
        x = x + (jnp.dot(h1.astype(bf), p["w2_t"].astype(bf),
                         preferred_element_type=jnp.float32) + p["b2"][0])
    return jnp.transpose(x, (1, 0, 2))


if __name__ == "__main__":
    L, N, D, H, LAYERS = 8, 2, 32, 4, 2

    key = jax.random.PRNGKey(0)
    kx, kp = jax.random.split(key)
    x = jax.random.normal(kx, (L, N, D), jnp.float32)          # (seq, batch, width)

    # two distinct additive float masks, shape (N, L, L), to exercise the
    # torch repeat(n_head,1,1) per-(batch,head) indexing path.
    causal = jnp.where(jnp.tril(jnp.ones((L, L), bool)), 0.0, -1e4)
    banded = jnp.where(jnp.triu(jnp.tril(jnp.ones((L, L), bool)), -2), 0.0, -1e4)
    attn_mask = jnp.stack([causal, banded], axis=0).astype(jnp.float32)

    params = init_params(kp, D, LAYERS, H)

    out = transformer_forward(x, attn_mask, params, H)
    out = jax.block_until_ready(out)

    ref = reference_forward(x, attn_mask, params, H)
    assert out.shape == (L, N, D)
    assert jnp.allclose(out, ref, atol=5e-3, rtol=5e-3), "mismatch vs JAX reference"

    print("KERNEL_OK")
</pallas_src>

<mosaic_0001>
module attributes {stable_mosaic.version = 11 : i64} {
  func.func @residual_block_kernel(%arg0: i32, %arg1: memref<2x8x8xf32, #tpu.memory_space<vmem>>, %arg2: memref<16x32xf32, #tpu.memory_space<vmem>>, %arg3: memref<1x32xf32, #tpu.memory_space<vmem>>, %arg4: memref<1x32xf32, #tpu.memory_space<vmem>>, %arg5: memref<32x32xbf16, #tpu.memory_space<vmem>>, %arg6: memref<32x32xbf16, #tpu.memory_space<vmem>>, %arg7: memref<32x32xbf16, #tpu.memory_space<vmem>>, %arg8: memref<1x32xf32, #tpu.memory_space<vmem>>, %arg9: memref<1x32xf32, #tpu.memory_space<vmem>>, %arg10: memref<1x32xf32, #tpu.memory_space<vmem>>, %arg11: memref<32x32xbf16, #tpu.memory_space<vmem>>, %arg12: memref<1x32xf32, #tpu.memory_space<vmem>>, %arg13: memref<1x32xf32, #tpu.memory_space<vmem>>, %arg14: memref<1x32xf32, #tpu.memory_space<vmem>>, %arg15: memref<32x128xbf16, #tpu.memory_space<vmem>>, %arg16: memref<1x128xf32, #tpu.memory_space<vmem>>, %arg17: memref<128x32xbf16, #tpu.memory_space<vmem>>, %arg18: memref<1x32xf32, #tpu.memory_space<vmem>>, %arg19: memref<16x32xf32, #tpu.memory_space<vmem>>) attributes {dimension_semantics = [#tpu.dimension_semantics<parallel>], iteration_bounds = array<i64: 1>, scalar_prefetch = 0 : i64, scratch_operands = 0 : i64, tpu.core_type = #tpu.core_type<tc>, window_params = [{pipeline_mode = #tpu.pipeline_mode<synchronous>, transform_indices = @transform_0, window_bounds = array<i64: 2, 8, 8>}, {transform_indices = @transform_1, window_bounds = array<i64: 16, 32>}, {pipeline_mode = #tpu.pipeline_mode<synchronous>, transform_indices = @transform_2, window_bounds = array<i64: 1, 32>}, {pipeline_mode = #tpu.pipeline_mode<synchronous>, transform_indices = @transform_3, window_bounds = array<i64: 1, 32>}, {pipeline_mode = #tpu.pipeline_mode<synchronous>, transform_indices = @transform_4, window_bounds = array<i64: 32, 32>}, {pipeline_mode = #tpu.pipeline_mode<synchronous>, transform_indices = @transform_5, window_bounds = array<i64: 32, 32>}, {pipeline_mode = #tpu.pipeline_mode<synchronous>, transform_indices = @transform_6, window_bounds = array<i64: 32, 32>}, {pipeline_mode = #tpu.pipeline_mode<synchronous>, transform_indices = @transform_7, window_bounds = array<i64: 1, 32>}, {pipeline_mode = #tpu.pipeline_mode<synchronous>, transform_indices = @transform_8, window_bounds = array<i64: 1, 32>}, {pipeline_mode = #tpu.pipeline_mode<synchronous>, transform_indices = @transform_9, window_bounds = array<i64: 1, 32>}, {pipeline_mode = #tpu.pipeline_mode<synchronous>, transform_indices = @transform_10, window_bounds = array<i64: 32, 32>}, {pipeline_mode = #tpu.pipeline_mode<synchronous>, transform_indices = @transform_11, window_bounds = array<i64: 1, 32>}, {pipeline_mode = #tpu.pipeline_mode<synchronous>, transform_indices = @transform_12, window_bounds = array<i64: 1, 32>}, {pipeline_mode = #tpu.pipeline_mode<synchronous>, transform_indices = @transform_13, window_bounds = array<i64: 1, 32>}, {pipeline_mode = #tpu.pipeline_mode<synchronous>, transform_indices = @transform_14, window_bounds = array<i64: 32, 128>}, {pipeline_mode = #tpu.pipeline_mode<synchronous>, transform_indices = @transform_15, window_bounds = array<i64: 1, 128>}, {pipeline_mode = #tpu.pipeline_mode<synchronous>, transform_indices = @transform_16, window_bounds = array<i64: 128, 32>}, {pipeline_mode = #tpu.pipeline_mode<synchronous>, transform_indices = @transform_17, window_bounds = array<i64: 1, 32>}, {transform_indices = @transform_18, window_bounds = array<i64: 16, 32>}]} {
    %c0 = arith.constant 0 : index
    %c0_0 = arith.constant 0 : index
    %0 = vector.load %arg2[%c0, %c0_0] : memref<16x32xf32, #tpu.memory_space<vmem>>, vector<16x32xf32>
    %c0_1 = arith.constant 0 : index
    %c0_2 = arith.constant 0 : index
    %1 = vector.load %arg3[%c0_1, %c0_2] : memref<1x32xf32, #tpu.memory_space<vmem>>, vector<1x32xf32>
    %2 = vector.shape_cast %1 : vector<1x32xf32> to vector<32xf32>
    %c0_3 = arith.constant 0 : index
    %c0_4 = arith.constant 0 : index
    %3 = vector.load %arg4[%c0_3, %c0_4] : memref<1x32xf32, #tpu.memory_space<vmem>>, vector<1x32xf32>
    %4 = vector.shape_cast %3 : vector<1x32xf32> to vector<32xf32>
    %cst = arith.constant dense<0.000000e+00> : vector<16xf32>
    %5 = vector.multi_reduction <add>, %0, %cst [1] : vector<16x32xf32> to vector<16xf32>
    %6 = vector.shape_cast %5 : vector<16xf32> to vector<16x1xf32>
    %cst_5 = arith.constant 3.200000e+01 : f32
    %7 = vector.broadcast %cst_5 : f32 to vector<16x1xf32>
    %8 = arith.divf %6, %7 : vector<16x1xf32>
    %9 = vector.broadcast %8 : vector<16x1xf32> to vector<16x32xf32>
    %10 = arith.subf %0, %9 : vector<16x32xf32>
    %11 = arith.mulf %10, %10 : vector<16x32xf32>
    %cst_6 = arith.constant dense<0.000000e+00> : vector<16xf32>
    %12 = vector.multi_reduction <add>, %11, %cst_6 [1] : vector<16x32xf32> to vector<16xf32>
    %13 = vector.shape_cast %12 : vector<16xf32> to vector<16x1xf32>
    %cst_7 = arith.constant 3.200000e+01 : f32
    %14 = vector.broadcast %cst_7 : f32 to vector<16x1xf32>
    %15 = arith.divf %13, %14 : vector<16x1xf32>
    %16 = vector.broadcast %8 : vector<16x1xf32> to vector<16x32xf32>
    %17 = arith.subf %0, %16 : vector<16x32xf32>
    %cst_8 = arith.constant 9.99999974E-6 : f32
    %18 = vector.broadcast %cst_8 : f32 to vector<16x1xf32>
    %19 = arith.addf %15, %18 : vector<16x1xf32>
    %20 = math.rsqrt %19 : vector<16x1xf32>
    %21 = vector.broadcast %20 : vector<16x1xf32> to vector<16x32xf32>
    %22 = arith.mulf %17, %21 : vector<16x32xf32>
    %23 = vector.shape_cast %2 : vector<32xf32> to vector<1x32xf32>
    %24 = vector.broadcast %23 : vector<1x32xf32> to vector<16x32xf32>
    %25 = arith.mulf %22, %24 : vector<16x32xf32>
    %26 = vector.shape_cast %4 : vector<32xf32> to vector<1x32xf32>
    %27 = vector.broadcast %26 : vector<1x32xf32> to vector<16x32xf32>
    %28 = arith.addf %25, %27 : vector<16x32xf32>
    %29 = arith.truncf %28 : vector<16x32xf32> to vector<16x32xbf16>
    %c0_9 = arith.constant 0 : index
    %c0_10 = arith.constant 0 : index
    %30 = vector.load %arg5[%c0_9, %c0_10] : memref<32x32xbf16, #tpu.memory_space<vmem>>, vector<32x32xbf16>
    %cst_11 = arith.constant dense<0.000000e+00> : vector<16x32xf32>
    %31 = tpu.matmul %29, %30, %cst_11 {dimension_numbers = #tpu.dot_dimension_numbers<[1], [0], [0], [1], [0, 0, 1, 1], [], []>} : vector<16x32xbf16>, vector<32x32xbf16>, vector<16x32xf32> -> vector<16x32xf32>
    %c0_12 = arith.constant 0 : index
    %c0_13 = arith.constant 0 : index
    %32 = vector.load %arg8[%c0_12, %c0_13] : memref<1x32xf32, #tpu.memory_space<vmem>>, vector<1x32xf32>
    %33 = vector.shape_cast %32 : vector<1x32xf32> to vector<32xf32>
    %34 = vector.shape_cast %33 : vector<32xf32> to vector<1x32xf32>
    %35 = vector.broadcast %34 : vector<1x32xf32> to vector<16x32xf32>
    %36 = arith.addf %31, %35 : vector<16x32xf32>
    %c0_14 = arith.constant 0 : index
    %c0_15 = arith.constant 0 : index
    %37 = vector.load %arg6[%c0_14, %c0_15] : memref<32x32xbf16, #tpu.memory_space<vmem>>, vector<32x32xbf16>
    %cst_16 = arith.constant dense<0.000000e+00> : vector<16x32xf32>
    %38 = tpu.matmul %29, %37, %cst_16 {dimension_numbers = #tpu.dot_dimension_numbers<[1], [0], [0], [1], [0, 0, 1, 1], [], []>} : vector<16x32xbf16>, vector<32x32xbf16>, vector<16x32xf32> -> vector<16x32xf32>
    %c0_17 = arith.constant 0 : index
    %c0_18 = arith.constant 0 : index
    %39 = vector.load %arg9[%c0_17, %c0_18] : memref<1x32xf32, #tpu.memory_space<vmem>>, vector<1x32xf32>
    %40 = vector.shape_cast %39 : vector<1x32xf32> to vector<32xf32>
    %41 = vector.shape_cast %40 : vector<32xf32> to vector<1x32xf32>
    %42 = vector.broadcast %41 : vector<1x32xf32> to vector<16x32xf32>
    %43 = arith.addf %38, %42 : vector<16x32xf32>
    %c0_19 = arith.constant 0 : index
    %c0_20 = arith.constant 0 : index
    %44 = vector.load %arg7[%c0_19, %c0_20] : memref<32x32xbf16, #tpu.memory_space<vmem>>, vector<32x32xbf16>
    %cst_21 = arith.constant dense<0.000000e+00> : vector<16x32xf32>
    %45 = tpu.matmul %29, %44, %cst_21 {dimension_numbers = #tpu.dot_dimension_numbers<[1], [0], [0], [1], [0, 0, 1, 1], [], []>} : vector<16x32xbf16>, vector<32x32xbf16>, vector<16x32xf32> -> vector<16x32xf32>
    %c0_22 = arith.constant 0 : index
    %c0_23 = arith.constant 0 : index
    %46 = vector.load %arg10[%c0_22, %c0_23] : memref<1x32xf32, #tpu.memory_space<vmem>>, vector<1x32xf32>
    %47 = vector.shape_cast %46 : vector<1x32xf32> to vector<32xf32>
    %48 = vector.shape_cast %47 : vector<32xf32> to vector<1x32xf32>
    %49 = vector.broadcast %48 : vector<1x32xf32> to vector<16x32xf32>
    %50 = arith.addf %45, %49 : vector<16x32xf32>
    %cst_24 = arith.constant 0.353553385 : f32
    %51 = vector.broadcast %cst_24 : f32 to vector<16x32xf32>
    %52 = arith.mulf %36, %51 : vector<16x32xf32>
    %53 = vector.extract_strided_slice %52 {offsets = [0, 0], sizes = [8, 8], strides = [1, 1]} : vector<16x32xf32> to vector<8x8xf32>
    %54 = vector.extract_strided_slice %52 {offsets = [0, 8], sizes = [8, 8], strides = [1, 1]} : vector<16x32xf32> to vector<8x8xf32>
    %55 = vector.extract_strided_slice %52 {offsets = [0, 16], sizes = [8, 8], strides = [1, 1]} : vector<16x32xf32> to vector<8x8xf32>
    %56 = vector.extract_strided_slice %52 {offsets = [0, 24], sizes = [8, 8], strides = [1, 1]} : vector<16x32xf32> to vector<8x8xf32>
    %57 = vector.shape_cast %53 : vector<8x8xf32> to vector<1x8x8xf32>
    %58 = vector.shape_cast %54 : vector<8x8xf32> to vector<1x8x8xf32>
    %59 = vector.shape_cast %55 : vector<8x8xf32> to vector<1x8x8xf32>
    %60 = vector.shape_cast %56 : vector<8x8xf32> to vector<1x8x8xf32>
    %61 = tpu.concatenate %57, %58, %59, %60 in 0 : vector<1x8x8xf32>, vector<1x8x8xf32>, vector<1x8x8xf32>, vector<1x8x8xf32> -> vector<4x8x8xf32>
    %62 = arith.truncf %61 : vector<4x8x8xf32> to vector<4x8x8xbf16>
    %63 = vector.extract_strided_slice %43 {offsets = [0, 0], sizes = [8, 8], strides = [1, 1]} : vector<16x32xf32> to vector<8x8xf32>
    %64 = vector.extract_strided_slice %43 {offsets = [0, 8], sizes = [8, 8], strides = [1, 1]} : vector<16x32xf32> to vector<8x8xf32>
    %65 = vector.extract_strided_slice %43 {offsets = [0, 16], sizes = [8, 8], strides = [1, 1]} : vector<16x32xf32> to vector<8x8xf32>
    %66 = vector.extract_strided_slice %43 {offsets = [0, 24], sizes = [8, 8], strides = [1, 1]} : vector<16x32xf32> to vector<8x8xf32>
    %67 = vector.shape_cast %63 : vector<8x8xf32> to vector<1x8x8xf32>
    %68 = vector.shape_cast %64 : vector<8x8xf32> to vector<1x8x8xf32>
    %69 = vector.shape_cast %65 : vector<8x8xf32> to vector<1x8x8xf32>
    %70 = vector.shape_cast %66 : vector<8x8xf32> to vector<1x8x8xf32>
    %71 = tpu.concatenate %67, %68, %69, %70 in 0 : vector<1x8x8xf32>, vector<1x8x8xf32>, vector<1x8x8xf32>, vector<1x8x8xf32> -> vector<4x8x8xf32>
    %72 = arith.truncf %71 : vector<4x8x8xf32> to vector<4x8x8xbf16>
    %73 = vector.extract_strided_slice %50 {offsets = [0, 0], sizes = [8, 8], strides = [1, 1]} : vector<16x32xf32> to vector<8x8xf32>
    %74 = vector.extract_strided_slice %50 {offsets = [0, 8], sizes = [8, 8], strides = [1, 1]} : vector<16x32xf32> to vector<8x8xf32>
    %75 = vector.extract_strided_slice %50 {offsets = [0, 16], sizes = [8, 8], strides = [1, 1]} : vector<16x32xf32> to vector<8x8xf32>
    %76 = vector.extract_strided_slice %50 {offsets = [0, 24], sizes = [8, 8], strides = [1, 1]} : vector<16x32xf32> to vector<8x8xf32>
    %77 = vector.shape_cast %73 : vector<8x8xf32> to vector<1x8x8xf32>
    %78 = vector.shape_cast %74 : vector<8x8xf32> to vector<1x8x8xf32>
    %79 = vector.shape_cast %75 : vector<8x8xf32> to vector<1x8x8xf32>
    %80 = vector.shape_cast %76 : vector<8x8xf32> to vector<1x8x8xf32>
    %81 = tpu.concatenate %77, %78, %79, %80 in 0 : vector<1x8x8xf32>, vector<1x8x8xf32>, vector<1x8x8xf32>, vector<1x8x8xf32> -> vector<4x8x8xf32>
    %82 = arith.truncf %81 : vector<4x8x8xf32> to vector<4x8x8xbf16>
    %c8_i32 = arith.constant 8 : i32
    %83 = arith.muli %arg0, %c8_i32 : i32
    %c0_i32 = arith.constant 0 : i32
    %84 = arith.addi %83, %c0_i32 : i32
    %c0_i32_25 = arith.constant 0 : i32
    %85 = arith.addi %84, %c0_i32_25 : i32
    %c2_i32 = arith.constant 2 : i32
    %c0_i32_26 = arith.constant 0 : i32
    %86 = arith.cmpi eq, %c2_i32, %c0_i32_26 : i32
    %c1_i32 = arith.constant 1 : i32
    %87 = arith.select %86, %c1_i32, %c2_i32 : i32
    %88 = arith.remsi %85, %87 : i32
    %c0_i32_27 = arith.constant 0 : i32
    %89 = arith.cmpi ne, %88, %c0_i32_27 : i32
    %c0_i32_28 = arith.constant 0 : i32
    %90 = arith.cmpi slt, %88, %c0_i32_28 : i32
    %c0_i32_29 = arith.constant 0 : i32
    %91 = arith.cmpi slt, %87, %c0_i32_29 : i32
    %92 = arith.xori %90, %91 : i1
    %93 = arith.andi %92, %89 : i1
    %94 = arith.addi %88, %87 : i32
    %95 = arith.select %93, %94, %88 : i32
    %96 = arith.index_cast %95 : i32 to index
    %c0_30 = arith.constant 0 : index
    %c0_31 = arith.constant 0 : index
    %97 = vector.load %arg1[%96, %c0_30, %c0_31] : memref<2x8x8xf32, #tpu.memory_space<vmem>>, vector<1x8x8xf32>
    %98 = vector.shape_cast %97 : vector<1x8x8xf32> to vector<8x8xf32>
    %c8_i32_32 = arith.constant 8 : i32
    %99 = arith.muli %arg0, %c8_i32_32 : i32
    %c0_i32_33 = arith.constant 0 : i32
    %100 = arith.addi %99, %c0_i32_33 : i32
    %c1_i32_34 = arith.constant 1 : i32
    %101 = arith.addi %100, %c1_i32_34 : i32
    %c2_i32_35 = arith.constant 2 : i32
    %c0_i32_36 = arith.constant 0 : i32
    %102 = arith.cmpi eq, %c2_i32_35, %c0_i32_36 : i32
    %c1_i32_37 = arith.constant 1 : i32
    %103 = arith.select %102, %c1_i32_37, %c2_i32_35 : i32
    %104 = arith.remsi %101, %103 : i32
    %c0_i32_38 = arith.constant 0 : i32
    %105 = arith.cmpi ne, %104, %c0_i32_38 : i32
    %c0_i32_39 = arith.constant 0 : i32
    %106 = arith.cmpi slt, %104, %c0_i32_39 : i32
    %c0_i32_40 = arith.constant 0 : i32
    %107 = arith.cmpi slt, %103, %c0_i32_40 : i32
    %108 = arith.xori %106, %107 : i1
    %109 = arith.andi %108, %105 : i1
    %110 = arith.addi %104, %103 : i32
    %111 = arith.select %109, %110, %104 : i32
    %112 = arith.index_cast %111 : i32 to index
    %c0_41 = arith.constant 0 : index
    %c0_42 = arith.constant 0 : index
    %113 = vector.load %arg1[%112, %c0_41, %c0_42] : memref<2x8x8xf32, #tpu.memory_space<vmem>>, vector<1x8x8xf32>
    %114 = vector.shape_cast %113 : vector<1x8x8xf32> to vector<8x8xf32>
    %c8_i32_43 = arith.constant 8 : i32
    %115 = arith.muli %arg0, %c8_i32_43 : i32
    %c0_i32_44 = arith.constant 0 : i32
    %116 = arith.addi %115, %c0_i32_44 : i32
    %c2_i32_45 = arith.constant 2 : i32
    %117 = arith.addi %116, %c2_i32_45 : i32
    %c2_i32_46 = arith.constant 2 : i32
    %c0_i32_47 = arith.constant 0 : i32
    %118 = arith.cmpi eq, %c2_i32_46, %c0_i32_47 : i32
    %c1_i32_48 = arith.constant 1 : i32
    %119 = arith.select %118, %c1_i32_48, %c2_i32_46 : i32
    %120 = arith.remsi %117, %119 : i32
    %c0_i32_49 = arith.constant 0 : i32
    %121 = arith.cmpi ne, %120, %c0_i32_49 : i32
    %c0_i32_50 = arith.constant 0 : i32
    %122 = arith.cmpi slt, %120, %c0_i32_50 : i32
    %c0_i32_51 = arith.constant 0 : i32
    %123 = arith.cmpi slt, %119, %c0_i32_51 : i32
    %124 = arith.xori %122, %123 : i1
    %125 = arith.andi %124, %121 : i1
    %126 = arith.addi %120, %119 : i32
    %127 = arith.select %125, %126, %120 : i32
    %128 = arith.index_cast %127 : i32 to index
    %c0_52 = arith.constant 0 : index
    %c0_53 = arith.constant 0 : index
    %129 = vector.load %arg1[%128, %c0_52, %c0_53] : memref<2x8x8xf32, #tpu.memory_space<vmem>>, vector<1x8x8xf32>
    %130 = vector.shape_cast %129 : vector<1x8x8xf32> to vector<8x8xf32>
    %c8_i32_54 = arith.constant 8 : i32
    %131 = arith.muli %arg0, %c8_i32_54 : i32
    %c0_i32_55 = arith.constant 0 : i32
    %132 = arith.addi %131, %c0_i32_55 : i32
    %c3_i32 = arith.constant 3 : i32
    %133 = arith.addi %132, %c3_i32 : i32
    %c2_i32_56 = arith.constant 2 : i32
    %c0_i32_57 = arith.constant 0 : i32
    %134 = arith.cmpi eq, %c2_i32_56, %c0_i32_57 : i32
    %c1_i32_58 = arith.constant 1 : i32
    %135 = arith.select %134, %c1_i32_58, %c2_i32_56 : i32
    %136 = arith.remsi %133, %135 : i32
    %c0_i32_59 = arith.constant 0 : i32
    %137 = arith.cmpi ne, %136, %c0_i32_59 : i32
    %c0_i32_60 = arith.constant 0 : i32
    %138 = arith.cmpi slt, %136, %c0_i32_60 : i32
    %c0_i32_61 = arith.constant 0 : i32
    %139 = arith.cmpi slt, %135, %c0_i32_61 : i32
    %140 = arith.xori %138, %139 : i1
    %141 = arith.andi %140, %137 : i1
    %142 = arith.addi %136, %135 : i32
    %143 = arith.select %141, %142, %136 : i32
    %144 = arith.index_cast %143 : i32 to index
    %c0_62 = arith.constant 0 : index
    %c0_63 = arith.constant 0 : index
    %145 = vector.load %arg1[%144, %c0_62, %c0_63] : memref<2x8x8xf32, #tpu.memory_space<vmem>>, vector<1x8x8xf32>
    %146 = vector.shape_cast %145 : vector<1x8x8xf32> to vector<8x8xf32>
    %147 = vector.shape_cast %98 : vector<8x8xf32> to vector<1x8x8xf32>
    %148 = vector.shape_cast %114 : vector<8x8xf32> to vector<1x8x8xf32>
    %149 = vector.shape_cast %130 : vector<8x8xf32> to vector<1x8x8xf32>
    %150 = vector.shape_cast %146 : vector<8x8xf32> to vector<1x8x8xf32>
    %151 = tpu.concatenate %147, %148, %149, %150 in 0 : vector<1x8x8xf32>, vector<1x8x8xf32>, vector<1x8x8xf32>, vector<1x8x8xf32> -> vector<4x8x8xf32>
    "tpu.trace_start"() <{level = 10 : i32, message = "hld,hmd->hlm"}> : () -> ()
    %cst_64 = arith.constant dense<0.000000e+00> : vector<4x8x8xf32>
    %152 = tpu.matmul %62, %72, %cst_64 {dimension_numbers = #tpu.dot_dimension_numbers<[2], [2], [1], [1], [0, 0, 0, 1, 1, 1], [0], [0]>} : vector<4x8x8xbf16>, vector<4x8x8xbf16>, vector<4x8x8xf32> -> vector<4x8x8xf32>
    "tpu.trace_stop"() : () -> ()
    %153 = arith.addf %152, %151 : vector<4x8x8xf32>
    %cst_65 = arith.constant dense<0xFF800000> : vector<4x8xf32>
    %154 = vector.multi_reduction <maximumf>, %153, %cst_65 [2] : vector<4x8x8xf32> to vector<4x8xf32>
    %155 = vector.shape_cast %154 : vector<4x8xf32> to vector<4x8x1xf32>
    %156 = vector.broadcast %155 : vector<4x8x1xf32> to vector<4x8x8xf32>
    %157 = arith.subf %153, %156 : vector<4x8x8xf32>
    %158 = math.exp %157 : vector<4x8x8xf32>
    %cst_66 = arith.constant dense<0.000000e+00> : vector<4x8xf32>
    %159 = vector.multi_reduction <add>, %158, %cst_66 [2] : vector<4x8x8xf32> to vector<4x8xf32>
    %160 = vector.shape_cast %159 : vector<4x8xf32> to vector<4x8x1xf32>
    %161 = tpu.reciprocal %160 {approx = true} : vector<4x8x1xf32> -> vector<4x8x1xf32>
    %162 = vector.broadcast %161 : vector<4x8x1xf32> to vector<4x8x8xf32>
    %163 = arith.mulf %158, %162 : vector<4x8x8xf32>
    %164 = arith.truncf %163 : vector<4x8x8xf32> to vector<4x8x8xbf16>
    "tpu.trace_start"() <{level = 10 : i32, message = "hlm,hmd->hld"}> : () -> ()
    %cst_67 = arith.constant dense<0.000000e+00> : vector<4x8x8xf32>
    %165 = tpu.matmul %164, %82, %cst_67 {dimension_numbers = #tpu.dot_dimension_numbers<[2], [1], [1], [2], [0, 0, 0, 1, 1, 2], [0], [0]>} : vector<4x8x8xbf16>, vector<4x8x8xbf16>, vector<4x8x8xf32> -> vector<4x8x8xf32>
    "tpu.trace_stop"() : () -> ()
    %166 = vector.extract_strided_slice %165 {offsets = [0, 0, 0], sizes = [1, 8, 8], strides = [1, 1, 1]} : vector<4x8x8xf32> to vector<1x8x8xf32>
    %167 = vector.shape_cast %166 : vector<1x8x8xf32> to vector<8x8xf32>
    %168 = vector.extract_strided_slice %165 {offsets = [1, 0, 0], sizes = [1, 8, 8], strides = [1, 1, 1]} : vector<4x8x8xf32> to vector<1x8x8xf32>
    %169 = vector.shape_cast %168 : vector<1x8x8xf32> to vector<8x8xf32>
    %170 = vector.extract_strided_slice %165 {offsets = [2, 0, 0], sizes = [1, 8, 8], strides = [1, 1, 1]} : vector<4x8x8xf32> to vector<1x8x8xf32>
    %171 = vector.shape_cast %170 : vector<1x8x8xf32> to vector<8x8xf32>
    %172 = vector.extract_strided_slice %165 {offsets = [3, 0, 0], sizes = [1, 8, 8], strides = [1, 1, 1]} : vector<4x8x8xf32> to vector<1x8x8xf32>
    %173 = vector.shape_cast %172 : vector<1x8x8xf32> to vector<8x8xf32>
    %174 = tpu.concatenate %167, %169, %171, %173 in 1 : vector<8x8xf32>, vector<8x8xf32>, vector<8x8xf32>, vector<8x8xf32> -> vector<8x32xf32>
    %175 = vector.extract_strided_slice %52 {offsets = [8, 0], sizes = [8, 8], strides = [1, 1]} : vector<16x32xf32> to vector<8x8xf32>
    %176 = vector.extract_strided_slice %52 {offsets = [8, 8], sizes = [8, 8], strides = [1, 1]} : vector<16x32xf32> to vector<8x8xf32>
    %177 = vector.extract_strided_slice %52 {offsets = [8, 16], sizes = [8, 8], strides = [1, 1]} : vector<16x32xf32> to vector<8x8xf32>
    %178 = vector.extract_strided_slice %52 {offsets = [8, 24], sizes = [8, 8], strides = [1, 1]} : vector<16x32xf32> to vector<8x8xf32>
    %179 = vector.shape_cast %175 : vector<8x8xf32> to vector<1x8x8xf32>
    %180 = vector.shape_cast %176 : vector<8x8xf32> to vector<1x8x8xf32>
    %181 = vector.shape_cast %177 : vector<8x8xf32> to vector<1x8x8xf32>
    %182 = vector.shape_cast %178 : vector<8x8xf32> to vector<1x8x8xf32>
    %183 = tpu.concatenate %179, %180, %181, %182 in 0 : vector<1x8x8xf32>, vector<1x8x8xf32>, vector<1x8x8xf32>, vector<1x8x8xf32> -> vector<4x8x8xf32>
    %184 = arith.truncf %183 : vector<4x8x8xf32> to vector<4x8x8xbf16>
    %185 = vector.extract_strided_slice %43 {offsets = [8, 0], sizes = [8, 8], strides = [1, 1]} : vector<16x32xf32> to vector<8x8xf32>
    %186 = vector.extract_strided_slice %43 {offsets = [8, 8], sizes = [8, 8], strides = [1, 1]} : vector<16x32xf32> to vector<8x8xf32>
    %187 = vector.extract_strided_slice %43 {offsets = [8, 16], sizes = [8, 8], strides = [1, 1]} : vector<16x32xf32> to vector<8x8xf32>
    %188 = vector.extract_strided_slice %43 {offsets = [8, 24], sizes = [8, 8], strides = [1, 1]} : vector<16x32xf32> to vector<8x8xf32>
    %189 = vector.shape_cast %185 : vector<8x8xf32> to vector<1x8x8xf32>
    %190 = vector.shape_cast %186 : vector<8x8xf32> to vector<1x8x8xf32>
    %191 = vector.shape_cast %187 : vector<8x8xf32> to vector<1x8x8xf32>
    %192 = vector.shape_cast %188 : vector<8x8xf32> to vector<1x8x8xf32>
    %193 = tpu.concatenate %189, %190, %191, %192 in 0 : vector<1x8x8xf32>, vector<1x8x8xf32>, vector<1x8x8xf32>, vector<1x8x8xf32> -> vector<4x8x8xf32>
    %194 = arith.truncf %193 : vector<4x8x8xf32> to vector<4x8x8xbf16>
    %195 = vector.extract_strided_slice %50 {offsets = [8, 0], sizes = [8, 8], strides = [1, 1]} : vector<16x32xf32> to vector<8x8xf32>
    %196 = vector.extract_strided_slice %50 {offsets = [8, 8], sizes = [8, 8], strides = [1, 1]} : vector<16x32xf32> to vector<8x8xf32>
    %197 = vector.extract_strided_slice %50 {offsets = [8, 16], sizes = [8, 8], strides = [1, 1]} : vector<16x32xf32> to vector<8x8xf32>
    %198 = vector.extract_strided_slice %50 {offsets = [8, 24], sizes = [8, 8], strides = [1, 1]} : vector<16x32xf32> to vector<8x8xf32>
    %199 = vector.shape_cast %195 : vector<8x8xf32> to vector<1x8x8xf32>
    %200 = vector.shape_cast %196 : vector<8x8xf32> to vector<1x8x8xf32>
    %201 = vector.shape_cast %197 : vector<8x8xf32> to vector<1x8x8xf32>
    %202 = vector.shape_cast %198 : vector<8x8xf32> to vector<1x8x8xf32>
    %203 = tpu.concatenate %199, %200, %201, %202 in 0 : vector<1x8x8xf32>, vector<1x8x8xf32>, vector<1x8x8xf32>, vector<1x8x8xf32> -> vector<4x8x8xf32>
    %204 = arith.truncf %203 : vector<4x8x8xf32> to vector<4x8x8xbf16>
    %c8_i32_68 = arith.constant 8 : i32
    %205 = arith.muli %arg0, %c8_i32_68 : i32
    %c4_i32 = arith.constant 4 : i32
    %206 = arith.addi %205, %c4_i32 : i32
    %c0_i32_69 = arith.constant 0 : i32
    %207 = arith.addi %206, %c0_i32_69 : i32
    %c2_i32_70 = arith.constant 2 : i32
    %c0_i32_71 = arith.constant 0 : i32
    %208 = arith.cmpi eq, %c2_i32_70, %c0_i32_71 : i32
    %c1_i32_72 = arith.constant 1 : i32
    %209 = arith.select %208, %c1_i32_72, %c2_i32_70 : i32
    %210 = arith.remsi %207, %209 : i32
    %c0_i32_73 = arith.constant 0 : i32
    %211 = arith.cmpi ne, %210, %c0_i32_73 : i32
    %c0_i32_74 = arith.constant 0 : i32
    %212 = arith.cmpi slt, %210, %c0_i32_74 : i32
    %c0_i32_75 = arith.constant 0 : i32
    %213 = arith.cmpi slt, %209, %c0_i32_75 : i32
    %214 = arith.xori %212, %213 : i1
    %215 = arith.andi %214, %211 : i1
    %216 = arith.addi %210, %209 : i32
    %217 = arith.select %215, %216, %210 : i32
    %218 = arith.index_cast %217 : i32 to index
    %c0_76 = arith.constant 0 : index
    %c0_77 = arith.constant 0 : index
    %219 = vector.load %arg1[%218, %c0_76, %c0_77] : memref<2x8x8xf32, #tpu.memory_space<vmem>>, vector<1x8x8xf32>
    %220 = vector.shape_cast %219 : vector<1x8x8xf32> to vector<8x8xf32>
    %c8_i32_78 = arith.constant 8 : i32
    %221 = arith.muli %arg0, %c8_i32_78 : i32
    %c4_i32_79 = arith.constant 4 : i32
    %222 = arith.addi %221, %c4_i32_79 : i32
    %c1_i32_80 = arith.constant 1 : i32
    %223 = arith.addi %222, %c1_i32_80 : i32
    %c2_i32_81 = arith.constant 2 : i32
    %c0_i32_82 = arith.constant 0 : i32
    %224 = arith.cmpi eq, %c2_i32_81, %c0_i32_82 : i32
    %c1_i32_83 = arith.constant 1 : i32
    %225 = arith.select %224, %c1_i32_83, %c2_i32_81 : i32
    %226 = arith.remsi %223, %225 : i32
    %c0_i32_84 = arith.constant 0 : i32
    %227 = arith.cmpi ne, %226, %c0_i32_84 : i32
    %c0_i32_85 = arith.constant 0 : i32
    %228 = arith.cmpi slt, %226, %c0_i32_85 : i32
    %c0_i32_86 = arith.constant 0 : i32
    %229 = arith.cmpi slt, %225, %c0_i32_86 : i32
    %230 = arith.xori %228, %229 : i1
    %231 = arith.andi %230, %227 : i1
    %232 = arith.addi %226, %225 : i32
    %233 = arith.select %231, %232, %226 : i32
    %234 = arith.index_cast %233 : i32 to index
    %c0_87 = arith.constant 0 : index
    %c0_88 = arith.constant 0 : index
    %235 = vector.load %arg1[%234, %c0_87, %c0_88] : memref<2x8x8xf32, #tpu.memory_space<vmem>>, vector<1x8x8xf32>
    %236 = vector.shape_cast %235 : vector<1x8x8xf32> to vector<8x8xf32>
    %c8_i32_89 = arith.constant 8 : i32
    %237 = arith.muli %arg0, %c8_i32_89 : i32
    %c4_i32_90 = arith.constant 4 : i32
    %238 = arith.addi %237, %c4_i32_90 : i32
    %c2_i32_91 = arith.constant 2 : i32
    %239 = arith.addi %238, %c2_i32_91 : i32
    %c2_i32_92 = arith.constant 2 : i32
    %c0_i32_93 = arith.constant 0 : i32
    %240 = arith.cmpi eq, %c2_i32_92, %c0_i32_93 : i32
    %c1_i32_94 = arith.constant 1 : i32
    %241 = arith.select %240, %c1_i32_94, %c2_i32_92 : i32
    %242 = arith.remsi %239, %241 : i32
    %c0_i32_95 = arith.constant 0 : i32
    %243 = arith.cmpi ne, %242, %c0_i32_95 : i32
    %c0_i32_96 = arith.constant 0 : i32
    %244 = arith.cmpi slt, %242, %c0_i32_96 : i32
    %c0_i32_97 = arith.constant 0 : i32
    %245 = arith.cmpi slt, %241, %c0_i32_97 : i32
    %246 = arith.xori %244, %245 : i1
    %247 = arith.andi %246, %243 : i1
    %248 = arith.addi %242, %241 : i32
    %249 = arith.select %247, %248, %242 : i32
    %250 = arith.index_cast %249 : i32 to index
    %c0_98 = arith.constant 0 : index
    %c0_99 = arith.constant 0 : index
    %251 = vector.load %arg1[%250, %c0_98, %c0_99] : memref<2x8x8xf32, #tpu.memory_space<vmem>>, vector<1x8x8xf32>
    %252 = vector.shape_cast %251 : vector<1x8x8xf32> to vector<8x8xf32>
    %c8_i32_100 = arith.constant 8 : i32
    %253 = arith.muli %arg0, %c8_i32_100 : i32
    %c4_i32_101 = arith.constant 4 : i32
    %254 = arith.addi %253, %c4_i32_101 : i32
    %c3_i32_102 = arith.constant 3 : i32
    %255 = arith.addi %254, %c3_i32_102 : i32
    %c2_i32_103 = arith.constant 2 : i32
    %c0_i32_104 = arith.constant 0 : i32
    %256 = arith.cmpi eq, %c2_i32_103, %c0_i32_104 : i32
    %c1_i32_105 = arith.constant 1 : i32
    %257 = arith.select %256, %c1_i32_105, %c2_i32_103 : i32
    %258 = arith.remsi %255, %257 : i32
    %c0_i32_106 = arith.constant 0 : i32
    %259 = arith.cmpi ne, %258, %c0_i32_106 : i32
    %c0_i32_107 = arith.constant 0 : i32
    %260 = arith.cmpi slt, %258, %c0_i32_107 : i32
    %c0_i32_108 = arith.constant 0 : i32
    %261 = arith.cmpi slt, %257, %c0_i32_108 : i32
    %262 = arith.xori %260, %261 : i1
    %263 = arith.andi %262, %259 : i1
    %264 = arith.addi %258, %257 : i32
    %265 = arith.select %263, %264, %258 : i32
    %266 = arith.index_cast %265 : i32 to index
    %c0_109 = arith.constant 0 : index
    %c0_110 = arith.constant 0 : index
    %267 = vector.load %arg1[%266, %c0_109, %c0_110] : memref<2x8x8xf32, #tpu.memory_space<vmem>>, vector<1x8x8xf32>
    %268 = vector.shape_cast %267 : vector<1x8x8xf32> to vector<8x8xf32>
    %269 = vector.shape_cast %220 : vector<8x8xf32> to vector<1x8x8xf32>
    %270 = vector.shape_cast %236 : vector<8x8xf32> to vector<1x8x8xf32>
    %271 = vector.shape_cast %252 : vector<8x8xf32> to vector<1x8x8xf32>
    %272 = vector.shape_cast %268 : vector<8x8xf32> to vector<1x8x8xf32>
    %273 = tpu.concatenate %269, %270, %271, %272 in 0 : vector<1x8x8xf32>, vector<1x8x8xf32>, vector<1x8x8xf32>, vector<1x8x8xf32> -> vector<4x8x8xf32>
    "tpu.trace_start"() <{level = 10 : i32, message = "hld,hmd->hlm"}> : () -> ()
    %cst_111 = arith.constant dense<0.000000e+00> : vector<4x8x8xf32>
    %274 = tpu.matmul %184, %194, %cst_111 {dimension_numbers = #tpu.dot_dimension_numbers<[2], [2], [1], [1], [0, 0, 0, 1, 1, 1], [0], [0]>} : vector<4x8x8xbf16>, vector<4x8x8xbf16>, vector<4x8x8xf32> -> vector<4x8x8xf32>
    "tpu.trace_stop"() : () -> ()
    %275 = arith.addf %274, %273 : vector<4x8x8xf32>
    %cst_112 = arith.constant dense<0xFF800000> : vector<4x8xf32>
    %276 = vector.multi_reduction <maximumf>, %275, %cst_112 [2] : vector<4x8x8xf32> to vector<4x8xf32>
    %277 = vector.shape_cast %276 : vector<4x8xf32> to vector<4x8x1xf32>
    %278 = vector.broadcast %277 : vector<4x8x1xf32> to vector<4x8x8xf32>
    %279 = arith.subf %275, %278 : vector<4x8x8xf32>
    %280 = math.exp %279 : vector<4x8x8xf32>
    %cst_113 = arith.constant dense<0.000000e+00> : vector<4x8xf32>
    %281 = vector.multi_reduction <add>, %280, %cst_113 [2] : vector<4x8x8xf32> to vector<4x8xf32>
    %282 = vector.shape_cast %281 : vector<4x8xf32> to vector<4x8x1xf32>
    %283 = tpu.reciprocal %282 {approx = true} : vector<4x8x1xf32> -> vector<4x8x1xf32>
    %284 = vector.broadcast %283 : vector<4x8x1xf32> to vector<4x8x8xf32>
    %285 = arith.mulf %280, %284 : vector<4x8x8xf32>
    %286 = arith.truncf %285 : vector<4x8x8xf32> to vector<4x8x8xbf16>
    "tpu.trace_start"() <{level = 10 : i32, message = "hlm,hmd->hld"}> : () -> ()
    %cst_114 = arith.constant dense<0.000000e+00> : vector<4x8x8xf32>
    %287 = tpu.matmul %286, %204, %cst_114 {dimension_numbers = #tpu.dot_dimension_numbers<[2], [1], [1], [2], [0, 0, 0, 1, 1, 2], [0], [0]>} : vector<4x8x8xbf16>, vector<4x8x8xbf16>, vector<4x8x8xf32> -> vector<4x8x8xf32>
    "tpu.trace_stop"() : () -> ()
    %288 = vector.extract_strided_slice %287 {offsets = [0, 0, 0], sizes = [1, 8, 8], strides = [1, 1, 1]} : vector<4x8x8xf32> to vector<1x8x8xf32>
    %289 = vector.shape_cast %288 : vector<1x8x8xf32> to vector<8x8xf32>
    %290 = vector.extract_strided_slice %287 {offsets = [1, 0, 0], sizes = [1, 8, 8], strides = [1, 1, 1]} : vector<4x8x8xf32> to vector<1x8x8xf32>
    %291 = vector.shape_cast %290 : vector<1x8x8xf32> to vector<8x8xf32>
    %292 = vector.extract_strided_slice %287 {offsets = [2, 0, 0], sizes = [1, 8, 8], strides = [1, 1, 1]} : vector<4x8x8xf32> to vector<1x8x8xf32>
    %293 = vector.shape_cast %292 : vector<1x8x8xf32> to vector<8x8xf32>
    %294 = vector.extract_strided_slice %287 {offsets = [3, 0, 0], sizes = [1, 8, 8], strides = [1, 1, 1]} : vector<4x8x8xf32> to vector<1x8x8xf32>
    %295 = vector.shape_cast %294 : vector<1x8x8xf32> to vector<8x8xf32>
    %296 = tpu.concatenate %289, %291, %293, %295 in 1 : vector<8x8xf32>, vector<8x8xf32>, vector<8x8xf32>, vector<8x8xf32> -> vector<8x32xf32>
    %297 = tpu.concatenate %174, %296 in 0 : vector<8x32xf32>, vector<8x32xf32> -> vector<16x32xf32>
    %298 = arith.truncf %297 : vector<16x32xf32> to vector<16x32xbf16>
    %c0_115 = arith.constant 0 : index
    %c0_116 = arith.constant 0 : index
    %299 = vector.load %arg11[%c0_115, %c0_116] : memref<32x32xbf16, #tpu.memory_space<vmem>>, vector<32x32xbf16>
    %cst_117 = arith.constant dense<0.000000e+00> : vector<16x32xf32>
    %300 = tpu.matmul %298, %299, %cst_117 {dimension_numbers = #tpu.dot_dimension_numbers<[1], [0], [0], [1], [0, 0, 1, 1], [], []>} : vector<16x32xbf16>, vector<32x32xbf16>, vector<16x32xf32> -> vector<16x32xf32>
    %c0_118 = arith.constant 0 : index
    %c0_119 = arith.constant 0 : index
    %301 = vector.load %arg12[%c0_118, %c0_119] : memref<1x32xf32, #tpu.memory_space<vmem>>, vector<1x32xf32>
    %302 = vector.shape_cast %301 : vector<1x32xf32> to vector<32xf32>
    %303 = vector.shape_cast %302 : vector<32xf32> to vector<1x32xf32>
    %304 = vector.broadcast %303 : vector<1x32xf32> to vector<16x32xf32>
    %305 = arith.addf %300, %304 : vector<16x32xf32>
    %306 = arith.addf %0, %305 : vector<16x32xf32>
    %c0_120 = arith.constant 0 : index
    %c0_121 = arith.constant 0 : index
    %307 = vector.load %arg13[%c0_120, %c0_121] : memref<1x32xf32, #tpu.memory_space<vmem>>, vector<1x32xf32>
    %308 = vector.shape_cast %307 : vector<1x32xf32> to vector<32xf32>
    %c0_122 = arith.constant 0 : index
    %c0_123 = arith.constant 0 : index
    %309 = vector.load %arg14[%c0_122, %c0_123] : memref<1x32xf32, #tpu.memory_space<vmem>>, vector<1x32xf32>
    %310 = vector.shape_cast %309 : vector<1x32xf32> to vector<32xf32>
    %cst_124 = arith.constant dense<0.000000e+00> : vector<16xf32>
    %311 = vector.multi_reduction <add>, %306, %cst_124 [1] : vector<16x32xf32> to vector<16xf32>
    %312 = vector.shape_cast %311 : vector<16xf32> to vector<16x1xf32>
    %cst_125 = arith.constant 3.200000e+01 : f32
    %313 = vector.broadcast %cst_125 : f32 to vector<16x1xf32>
    %314 = arith.divf %312, %313 : vector<16x1xf32>
    %315 = vector.broadcast %314 : vector<16x1xf32> to vector<16x32xf32>
    %316 = arith.subf %306, %315 : vector<16x32xf32>
    %317 = arith.mulf %316, %316 : vector<16x32xf32>
    %cst_126 = arith.constant dense<0.000000e+00> : vector<16xf32>
    %318 = vector.multi_reduction <add>, %317, %cst_126 [1] : vector<16x32xf32> to vector<16xf32>
    %319 = vector.shape_cast %318 : vector<16xf32> to vector<16x1xf32>
    %cst_127 = arith.constant 3.200000e+01 : f32
    %320 = vector.broadcast %cst_127 : f32 to vector<16x1xf32>
    %321 = arith.divf %319, %320 : vector<16x1xf32>
    %322 = vector.broadcast %314 : vector<16x1xf32> to vector<16x32xf32>
    %323 = arith.subf %306, %322 : vector<16x32xf32>
    %cst_128 = arith.constant 9.99999974E-6 : f32
    %324 = vector.broadcast %cst_128 : f32 to vector<16x1xf32>
    %325 = arith.addf %321, %324 : vector<16x1xf32>
    %326 = math.rsqrt %325 : vector<16x1xf32>
    %327 = vector.broadcast %326 : vector<16x1xf32> to vector<16x32xf32>
    %328 = arith.mulf %323, %327 : vector<16x32xf32>
    %329 = vector.shape_cast %308 : vector<32xf32> to vector<1x32xf32>
    %330 = vector.broadcast %329 : vector<1x32xf32> to vector<16x32xf32>
    %331 = arith.mulf %328, %330 : vector<16x32xf32>
    %332 = vector.shape_cast %310 : vector<32xf32> to vector<1x32xf32>
    %333 = vector.broadcast %332 : vector<1x32xf32> to vector<16x32xf32>
    %334 = arith.addf %331, %333 : vector<16x32xf32>
    %335 = arith.truncf %334 : vector<16x32xf32> to vector<16x32xbf16>
    %c0_129 = arith.constant 0 : index
    %c0_130 = arith.constant 0 : index
    %336 = vector.load %arg15[%c0_129, %c0_130] : memref<32x128xbf16, #tpu.memory_space<vmem>>, vector<32x128xbf16>
    %cst_131 = arith.constant dense<0.000000e+00> : vector<16x128xf32>
    %337 = tpu.matmul %335, %336, %cst_131 {dimension_numbers = #tpu.dot_dimension_numbers<[1], [0], [0], [1], [0, 0, 1, 1], [], []>} : vector<16x32xbf16>, vector<32x128xbf16>, vector<16x128xf32> -> vector<16x128xf32>
    %c0_132 = arith.constant 0 : index
    %c0_133 = arith.constant 0 : index
    %338 = vector.load %arg16[%c0_132, %c0_133] : memref<1x128xf32, #tpu.memory_space<vmem>>, vector<1x128xf32>
    %339 = vector.shape_cast %338 : vector<1x128xf32> to vector<128xf32>
    %340 = vector.shape_cast %339 : vector<128xf32> to vector<1x128xf32>
    %341 = vector.broadcast %340 : vector<1x128xf32> to vector<16x128xf32>
    %342 = arith.addf %337, %341 : vector<16x128xf32>
    %cst_134 = arith.constant 1.702000e+00 : f32
    %343 = vector.broadcast %cst_134 : f32 to vector<16x128xf32>
    %344 = arith.mulf %343, %342 : vector<16x128xf32>
    %345 = arith.negf %344 : vector<16x128xf32>
    %346 = math.exp %345 : vector<16x128xf32>
    %cst_135 = arith.constant 1.000000e+00 : f32
    %347 = vector.broadcast %cst_135 : f32 to vector<16x128xf32>
    %348 = arith.addf %347, %346 : vector<16x128xf32>
    %349 = arith.divf %347, %348 : vector<16x128xf32>
    %350 = arith.mulf %342, %349 : vector<16x128xf32>
    %351 = arith.truncf %350 : vector<16x128xf32> to vector<16x128xbf16>
    %c0_136 = arith.constant 0 : index
    %c0_137 = arith.constant 0 : index
    %352 = vector.load %arg17[%c0_136, %c0_137] : memref<128x32xbf16, #tpu.memory_space<vmem>>, vector<128x32xbf16>
    %cst_138 = arith.constant dense<0.000000e+00> : vector<16x32xf32>
    %353 = tpu.matmul %351, %352, %cst_138 {dimension_numbers = #tpu.dot_dimension_numbers<[1], [0], [0], [1], [0, 0, 1, 1], [], []>} : vector<16x128xbf16>, vector<128x32xbf16>, vector<16x32xf32> -> vector<16x32xf32>
    %c0_139 = arith.constant 0 : index
    %c0_140 = arith.constant 0 : index
    %354 = vector.load %arg18[%c0_139, %c0_140] : memref<1x32xf32, #tpu.memory_space<vmem>>, vector<1x32xf32>
    %355 = vector.shape_cast %354 : vector<1x32xf32> to vector<32xf32>
    %356 = vector.shape_cast %355 : vector<32xf32> to vector<1x32xf32>
    %357 = vector.broadcast %356 : vector<1x32xf32> to vector<16x32xf32>
    %358 = arith.addf %353, %357 : vector<16x32xf32>
    %359 = arith.addf %306, %358 : vector<16x32xf32>
    %c0_141 = arith.constant 0 : index
    %c0_142 = arith.constant 0 : index
    %360 = vector.load %arg19[%c0_141, %c0_142] : memref<16x32xf32, #tpu.memory_space<vmem>>, vector<16x32xf32>
    tpu.vector_store %arg19[%c0_141, %c0_142], %359 {strides = array<i32>} : memref<16x32xf32, #tpu.memory_space<vmem>>, vector<16x32xf32>,
    return
  }
  func.func @transform_0(%arg0: i32) -> (i32, i32, i32) {
    %c0_i32 = arith.constant 0 : i32
    %c0_i32_0 = arith.constant 0 : i32
    %c0_i32_1 = arith.constant 0 : i32
    %c0_i32_2 = arith.constant 0 : i32
    return %c0_i32, %c0_i32_0, %c0_i32_1 : i32, i32, i32
  }
  func.func @transform_1(%arg0: i32) -> (i32, i32) {
    %c0_i32 = arith.constant 0 : i32
    %c0_i32_0 = arith.constant 0 : i32
    return %arg0, %c0_i32 : i32, i32
  }
  func.func @transform_2(%arg0: i32) -> (i32, i32) {
    %c0_i32 = arith.constant 0 : i32
    %c0_i32_0 = arith.constant 0 : i32
    %c0_i32_1 = arith.constant 0 : i32
    return %c0_i32, %c0_i32_0 : i32, i32
  }
  func.func @transform_3(%arg0: i32) -> (i32, i32) {
    %c0_i32 = arith.constant 0 : i32
    %c0_i32_0 = arith.constant 0 : i32
    %c0_i32_1 = arith.constant 0 : i32
    return %c0_i32, %c0_i32_0 : i32, i32
  }
  func.func @transform_4(%arg0: i32) -> (i32, i32) {
    %c0_i32 = arith.constant 0 : i32
    %c0_i32_0 = arith.constant 0 : i32
    %c0_i32_1 = arith.constant 0 : i32
    return %c0_i32, %c0_i32_0 : i32, i32
  }
  func.func @transform_5(%arg0: i32) -> (i32, i32) {
    %c0_i32 = arith.constant 0 : i32
    %c0_i32_0 = arith.constant 0 : i32
    %c0_i32_1 = arith.constant 0 : i32
    return %c0_i32, %c0_i32_0 : i32, i32
  }
  func.func @transform_6(%arg0: i32) -> (i32, i32) {
    %c0_i32 = arith.constant 0 : i32
    %c0_i32_0 = arith.constant 0 : i32
    %c0_i32_1 = arith.constant 0 : i32
    return %c0_i32, %c0_i32_0 : i32, i32
  }
  func.func @transform_7(%arg0: i32) -> (i32, i32) {
    %c0_i32 = arith.constant 0 : i32
    %c0_i32_0 = arith.constant 0 : i32
    %c0_i32_1 = arith.constant 0 : i32
    return %c0_i32, %c0_i32_0 : i32, i32
  }
  func.func @transform_8(%arg0: i32) -> (i32, i32) {
    %c0_i32 = arith.constant 0 : i32
    %c0_i32_0 = arith.constant 0 : i32
    %c0_i32_1 = arith.constant 0 : i32
    return %c0_i32, %c0_i32_0 : i32, i32
  }
  func.func @transform_9(%arg0: i32) -> (i32, i32) {
    %c0_i32 = arith.constant 0 : i32
    %c0_i32_0 = arith.constant 0 : i32
    %c0_i32_1 = arith.constant 0 : i32
    return %c0_i32, %c0_i32_0 : i32, i32
  }
  func.func @transform_10(%arg0: i32) -> (i32, i32) {
    %c0_i32 = arith.constant 0 : i32
    %c0_i32_0 = arith.constant 0 : i32
    %c0_i32_1 = arith.constant 0 : i32
    return %c0_i32, %c0_i32_0 : i32, i32
  }
  func.func @transform_11(%arg0: i32) -> (i32, i32) {
    %c0_i32 = arith.constant 0 : i32
    %c0_i32_0 = arith.constant 0 : i32
    %c0_i32_1 = arith.constant 0 : i32
    return %c0_i32, %c0_i32_0 : i32, i32
  }
  func.func @transform_12(%arg0: i32) -> (i32, i32) {
    %c0_i32 = arith.constant 0 : i32
    %c0_i32_0 = arith.constant 0 : i32
    %c0_i32_1 = arith.constant 0 : i32
    return %c0_i32, %c0_i32_0 : i32, i32
  }
  func.func @transform_13(%arg0: i32) -> (i32, i32) {
    %c0_i32 = arith.constant 0 : i32
    %c0_i32_0 = arith.constant 0 : i32
    %c0_i32_1 = arith.constant 0 : i32
    return %c0_i32, %c0_i32_0 : i32, i32
  }
  func.func @transform_14(%arg0: i32) -> (i32, i32) {
    %c0_i32 = arith.constant 0 : i32
    %c0_i32_0 = arith.constant 0 : i32
    %c0_i32_1 = arith.constant 0 : i32
    return %c0_i32, %c0_i32_0 : i32, i32
  }
  func.func @transform_15(%arg0: i32) -> (i32, i32) {
    %c0_i32 = arith.constant 0 : i32
    %c0_i32_0 = arith.constant 0 : i32
    %c0_i32_1 = arith.constant 0 : i32
    return %c0_i32, %c0_i32_0 : i32, i32
  }
  func.func @transform_16(%arg0: i32) -> (i32, i32) {
    %c0_i32 = arith.constant 0 : i32
    %c0_i32_0 = arith.constant 0 : i32
    %c0_i32_1 = arith.constant 0 : i32
    return %c0_i32, %c0_i32_0 : i32, i32
  }
  func.func @transform_17(%arg0: i32) -> (i32, i32) {
    %c0_i32 = arith.constant 0 : i32
    %c0_i32_0 = arith.constant 0 : i32
    %c0_i32_1 = arith.constant 0 : i32
    return %c0_i32, %c0_i32_0 : i32, i32
  }
  func.func @transform_18(%arg0: i32) -> (i32, i32) {
    %c0_i32 = arith.constant 0 : i32
    %c0_i32_0 = arith.constant 0 : i32
    return %arg0, %c0_i32 : i32, i32
  }
}

</mosaic_0001>

<bundles_post_ra>
// kernel: tpu_custom_call.1
= control target key start
LH: loop header
LB: loop body
LE: loop exit
PB: predicated region body
PF: predicated region fallthrough
CT: control target
= control target key end

     0   :  { %s2623_s0 = inlined_call_operand.vmem [shape: f32[2,8,8], index: 0, kind: input, shape index: {}]   ;;  %s2624_s1 = inlined_call_operand.vmem [shape: f32[16,32], index: 1, kind: input, shape index: {}]   ;;  %s2625_s2 = inlined_call_operand.vmem [shape: f32[1,32], index: 2, kind: input, shape index: {}]   ;;  %s2626_s3 = inlined_call_operand.vmem [shape: f32[1,32], index: 3, kind: input, shape index: {}]   ;;  %s2627_s4 = inlined_call_operand.vmem [shape: bf16[32,32], index: 4, kind: input, shape index: {}]   ;;  %s2628_s5 = inlined_call_operand.vmem [shape: bf16[32,32], index: 5, kind: input, shape index: {}]   ;;  %s2629_s6 = inlined_call_operand.vmem [shape: bf16[32,32], index: 6, kind: input, shape index: {}]   ;;  %s2630_s7 = inlined_call_operand.vmem [shape: f32[1,32], index: 7, kind: input, shape index: {}]   ;;  %s2631_s8 = inlined_call_operand.vmem [shape: f32[1,32], index: 8, kind: input, shape index: {}]   ;;  %s2632_s9 = inlined_call_operand.vmem [shape: f32[1,32], index: 9, kind: input, shape index: {}]   ;;  %s2633_s10 = inlined_call_operand.hbm [shape: bf16[32,32], index: 10, kind: input, shape index: {}]   ;;  %s2634_s11 = inlined_call_operand.vmem [shape: f32[1,32], index: 11, kind: input, shape index: {}]   ;;  %s2635_s12 = inlined_call_operand.vmem [shape: f32[1,32], index: 12, kind: input, shape index: {}]   ;;  %s2636_s13 = inlined_call_operand.vmem [shape: f32[1,32], index: 13, kind: input, shape index: {}]   ;;  %s2637_s14 = inlined_call_operand.hbm [shape: bf16[32,128], index: 14, kind: input, shape index: {}]   ;;  %s2638_s15 = inlined_call_operand.vmem [shape: f32[1,128], index: 15, kind: input, shape index: {}]   ;;  %s2639_s16 = inlined_call_operand.vmem [shape: bf16[128,32], index: 16, kind: input, shape index: {}]   ;;  %s2640_s17 = inlined_call_operand.vmem [shape: f32[1,32], index: 17, kind: input, shape index: {}]   ;;  %s2641_s18 = inlined_call_operand.hbm [shape: f32[16,32], index: 18, kind: output, shape index: {}]  }
   0x1   :  { %2644 = sst [smem:[#allocation11_spill]] %s2623_s0 }
   0x2   :  { %2645 = sst [smem:[#allocation12_spill]] %s2624_s1 }
   0x3   :  { %2646 = sst [smem:[#allocation13_spill]] %s2625_s2 }
   0x4   :  { %23 = vsyncpa [#allocation3], 0 }
   0x5   :  { %24 = vsyncpa [#allocation6], 0 }
   0x6   :  { %25 = vsyncpa [#allocation4], 0  ;;  %s2190_s27 = smov [#allocation2]  }
   0x7   :  { %s51_s28 = sshll.u32 %s2190_s27, 4  ;;  %s52_s28 = int_to_ptr.vmem [resolvable:$true] %s51_s28 }
   0x8   :  { %s2132_s29 = scalar_lea.vmem %s52_s28, 256  ;;  %p2137_p1 = scmp.lt.s32.totalorder %s52_s28, %s52_s28 }
   0x9   :  { %p2133_p0 = scmp.ne.s32.totalorder %s52_s28, %s2132_s29  ;;  %p2138_p2 = scmp.lt.s32.totalorder %s2132_s29, %s2132_s29 }
   0xb   :  { %p2139_p3 = por %p2138_p2, %p2137_p1 }
   0xd   :  { %p2140_p4 = pnand %p2139_p3, %p2133_p0 }
   0xf   :  { %2143 = shalt.err (!%p2140_p4)
}
  0x10   :  { %s2191_s30 = smov 64   ;;  %s2192_s0 = smov 4  }
  0x11   :  { %57 = dma.hbm_to_vmem [thread:$0]  %s2633_s10, 256, %s52_s28, [#allocation3], %s2191_s30, %s2191_s30, %s2192_s0  }
  0x12   :  { %s2193_s20 = smov [#allocation5]  }
  0x13   :  { %s69_s21 = sshll.u32 %s2193_s20, 4  ;;  %s70_s21 = int_to_ptr.vmem [resolvable:$true] %s69_s21 }
  0x14   :  { %s2152_s22 = scalar_lea.vmem %s70_s21, 256  ;;  %p2157_p6 = scmp.lt.s32.totalorder %s70_s21, %s70_s21 }
  0x15   :  { %p2153_p5 = scmp.ne.s32.totalorder %s70_s21, %s2152_s22  ;;  %p2158_p7 = scmp.lt.s32.totalorder %s2152_s22, %s2152_s22 }
  0x17   :  { %p2159_p8 = por %p2158_p7, %p2157_p6 }
  0x19   :  { %p2160_p9 = pnand %p2159_p8, %p2153_p5 }
  0x1b   :  { %2163 = shalt.err (!%p2160_p9)
}
  0x1c   :  { %75 = dma.hbm_to_vmem [thread:$0]  %s2637_s14, 256, %s70_s21, [#allocation6], %s2191_s30, %s2191_s30, %s2192_s0  }
  0x1d   :  { %2184 = dma.done.wait [#allocation3], 256  }
  0x1e   :  { %2185 = vsyncadd [#allocation3], 4294967040 }
  0x1f   :  { %2186 = dma.done.wait [#allocation6], 256  }
  0x20   :  { %2187 = vsyncadd [#allocation6], 4294967040  ;;  %vm93_vm0 = vcmask 261120   ;;  %s2647_s25 = sld [smem:[#allocation12_spill]]  ;;  %v2058_v14 = vld [vmem:[%s2627_s4 + $0x8] sm:$0xff]   ;;  %v2194_v15 = vmov 0.0  }
  0x21   :  { %1873 = vmatprep.subr.bf16.mxu0 %v2194_v15  ;;  %vm2195_vm1 = vmmov 0   ;;  %v2059_v16 = vld [vmem:[%s2627_s4] sm:$0xff]   ;;  %1897 = vmatprep.subr.bf16.mxu1 %v2194_v15  ;;  %s2648_s19 = sld [smem:[#allocation13_spill]]  ;;  %v2060_v33 = vld [vmem:[%s2628_s5 + $0x8] sm:$0xff]   ;;  %vm441_vm2 = vcmask 64512   ;;  %s2198_s28 = smov 104  }
  0x22   :  { %1877 = vmatprep.mubr.msk.bf16.mxu0 %vm2195_vm1, %v2194_v15  ;;  %1874 = vmatpush3.bf16.msra.mxu0 %v2058_v14  ;;  %v1763_v29 = vld [vmem:[%s2626_s3] ss:$0 sm:$0xff]  ;;  %v2062_v36 = vld [vmem:[%s2629_s6 + $0x8] sm:$0xff]   ;;  %vm677_vm3 = vcmask 1043456   ;;  %s2649_s4 = sld [smem:[#allocation11_spill]]  ;;  %s2199_s1 = smov 8  }
  0x23   :  { %1875 = vmatprep.subr.bf16.mxu0 %v2194_v15  ;;  %1899 = vmatprep.mubr.msk.bf16.mxu1 %vm2195_vm1, %v2194_v15  ;;  %v2061_v35 = vld [vmem:[%s2628_s5] sm:$0xff]   ;;  %s2200_s20 = smov 16   ;;  %s2201_s21 = smov 24   ;;  %vm872_vm4 = vcmask 130048   ;;  %vm874_vm5 = vcmask 195584  }
  0x24   :  { %v2063_v37 = vld [vmem:[%s2629_s6] sm:$0xff]   ;;  %s2196_s6 = smov 120  }
  0x25   :  { %v1764_v38 = vld [vmem:[%s2630_s7] ss:$0 sm:$0xff]  ;;  %s2197_s7 = smov 112  }
  0x26   :  { %v2308_v0 = vld [vmem:[%s2647_s25] sm:$0xff]  ;;  %v2313_v1 = vld [vmem:[%s2647_s25 + $0x8] sm:$0xff]  ;;  %1876 = vmatpush3.bf16.msra.mxu0 %v2059_v16 }
  0x27   :  { %v94_v2 = vsel %vm93_vm0, %v2308_v0, 0.0  ;;  %v97_v3 = vsel %vm93_vm0, %v2313_v1, 0.0  ;;  %1881 = vmatprep.subr.bf16.mxu0 %v2194_v15  ;;  %v1762_v25 = vld [vmem:[%s2648_s19] ss:$0 sm:$0xff] }
  0x28   :  { %95 = vadd.xlane.f32.xlu0 %v94_v2  ;;  %v1768_v46 = vld [vmem:[%s2631_s8] ss:$0 sm:$0xff] }
  0x29   :  { %v1772_v58 = vld [vmem:[%s2632_s9] ss:$0 sm:$0xff] }
  0x2c   :  { %98 = vadd.xlane.f32.xlu0 %v97_v3 }
  0xb1   :  { %v96_v4 = vpop.xlane.xlu0 %95 }
  0xb2   :  { %v101_v5 = vmul.f32 0.03125, %v96_v4 }
  0xb4   :  { %v103_v6 = vsub.f32 %v2308_v0, %v101_v5 }
  0xb5   :  { %v99_v7 = vpop.xlane.xlu0 %98 }
  0xb6   :  { %v102_v8 = vmul.f32 0.03125, %v99_v7  ;;  %v105_v9 = vmul.f32 %v103_v6, %v103_v6 }
  0xb8   :  { %v104_v10 = vsub.f32 %v2313_v1, %v102_v8  ;;  %v107_v11 = vsel %vm93_vm0, %v105_v9, 0.0 }
  0xb9   :  { %108 = vadd.xlane.f32.xlu1 %v107_v11 }
  0xba   :  { %v106_v12 = vmul.f32 %v104_v10, %v104_v10 }
  0xbc   :  { %v110_v13 = vsel %vm93_vm0, %v106_v12, 0.0 }
  0xbd   :  { %111 = vadd.xlane.f32.xlu1 %v110_v13 }
 0x142   :  { %v109_v17 = vpop.xlane.xlu1 %108 }
 0x143   :  { %v113_v18 = vmul.f32 0.03125, %v109_v17 }
 0x145   :  { %v115_v19 = vadd.f32 1e-05, %v113_v18 }
 0x146   :  { %v112_v20 = vpop.xlane.xlu1 %111 }
 0x147   :  { %2076 = vrsqrt.f32 %v115_v19  ;;  %v114_v21 = vmul.f32 0.03125, %v112_v20  ;;  %v2418_v19 = vld [vmem:[%s2649_s4] sm:$0xff] }
 0x149   :  { %v116_v22 = vadd.f32 1e-05, %v114_v21 }
 0x14b   :  { %2078 = vrsqrt.f32 %v116_v22 }
 0x154   :  { %v2077_v23 = vpop.eup %2076 }
 0x155   :  { %v119_v24 = vmul.f32 %v2077_v23, %v103_v6 }
 0x157   :  { %v127_v28 = vmul.f32 %v1762_v25, %v119_v24 }
 0x158   :  { %v2079_v26 = vpop.eup %2078 }
 0x159   :  { %v120_v27 = vmul.f32 %v2079_v26, %v104_v10  ;;  %v135_v31 = vadd.f32 %v1763_v29, %v127_v28  ;;  %v2425_v26 = vld [vmem:[%s2649_s4 + $0x8] sm:$0xff] }
 0x15b   :  { %v128_v30 = vmul.f32 %v1762_v25, %v120_v27 }
 0x15d   :  { %v136_v32 = vadd.f32 %v1763_v29, %v128_v30 }
 0x15f   :  { %v137_v34 = vpack.c.bf16 %v136_v32, %v135_v31 }
 0x161   :  { %1878 = vmatmul.mubr.msk.bf16.vlgmr.msra.gmra.mxu0 %vm93_vm0, %v137_v34 }
 0x162   :  { %1882 = vmatpush3.bf16.msra.mxu0 %v2060_v33  ;;  %1885 = vmatprep.mubr.msk.bf16.mxu0 %vm2195_vm1, %v2194_v15 }
 0x163   :  { %1883 = vmatprep.subr.bf16.mxu0 %v2194_v15 }
 0x166   :  { %1884 = vmatpush3.bf16.msra.mxu0 %v2061_v35 }
 0x167   :  { %1889 = vmatprep.subr.bf16.mxu0 %v2194_v15 }
 0x169   :  { %1886 = vmatmul.mubr.msk.bf16.vlgmr.msra.gmra.mxu0 %vm93_vm0, %v137_v34 }
 0x16a   :  { %1890 = vmatpush3.bf16.msra.mxu0 %v2062_v36  ;;  %1893 = vmatprep.mubr.msk.bf16.mxu0 %vm2195_vm1, %v2194_v15 }
 0x16b   :  { %1891 = vmatprep.subr.bf16.mxu0 %v2194_v15 }
 0x16e   :  { %1892 = vmatpush3.bf16.msra.mxu0 %v2063_v37 }
 0x16f   :  { %1903 = vmatprep.subr.bf16.mxu0 %v2194_v15 }
 0x171   :  { %1894 = vmatmul.mubr.msk.bf16.vlgmr.msra.gmra.mxu0 %vm93_vm0, %v137_v34 }
 0x172   :  { %1905 = vmatprep.mubr.msk.bf16.mxu0 %vm2195_vm1, %v2194_v15 }
 0x221   :  { %v198_v39 = vpop.f32.mrf.mxu0 }
 0x222   :  { %v199_v40 = vadd.f32 %v1764_v38, %v198_v39 }
 0x223   :  { %v1879_v41 = vpop.f32.mrf.mxu0 }
 0x224   :  { %v333_v42 = vmul.f32 0.35355338, %v199_v40 }
 0x225   :  { %v201_v43 = vpop.f32.mrf.mxu0 }
 0x226   :  { %v2371_v44 = vadd.f32 %v1764_v38, %v201_v43  ;;  %336 = vrot.lane.b32.xlu1 %v333_v42, %s2196_s6  ;;  %v345_v57 = vpack.c.bf16 %v333_v42, %v333_v42 }
 0x227   :  { %v1880_v45 = vpop.f32.mrf.mxu0 }
 0x229   :  { %v262_v47 = vpop.f32.mrf.mxu0 }
 0x22a   :  { %v263_v48 = vadd.f32 %v1768_v46, %v262_v47 }
 0x22b   :  { %v1887_v49 = vpop.f32.mrf.mxu0 }
 0x22c   :  { %353 = vrot.lane.b32.xlu1 %v263_v48, %s2197_s7  ;;  %350 = vrot.lane.b32.xlu0 %v263_v48, %s2196_s6  ;;  %v359_v50 = vpack.c.bf16 %v263_v48, %v263_v48 }
 0x22d   :  { %v265_v51 = vpop.f32.mrf.mxu0 }
 0x22e   :  { %v2379_v52 = vadd.f32 %v1768_v46, %v265_v51  ;;  %v446_v53 = vsel %vm441_vm2, %v359_v50, 0 }
 0x22f   :  { %v1888_v54 = vpop.f32.mrf.mxu0  ;;  %1898 = vmatpush3.bf16.xpose.msra.mxu1 %v446_v53 }
 0x230   :  { %356 = vrot.lane.b32.xlu1 %v263_v48, %s2198_s28  ;;  %339 = vrot.lane.b32.xlu0 %v333_v42, %s2197_s7 }
 0x231   :  { %v326_v55 = vpop.f32.mrf.mxu0  ;;  %1909 = vmatprep.subr.bf16.mxu1 %v2194_v15 }
 0x232   :  { %v2394_v5 = vadd.f32 %v1772_v58, %v326_v55 }
 0x233   :  { %v1895_v56 = vpop.f32.mrf.mxu0 }
 0x234   :  { %342 = vrot.lane.b32.xlu1 %v333_v42, %s2198_s28  ;;  %v373_v11 = vpack.c.bf16 %v2394_v5, %v2394_v5 }
 0x235   :  { %v329_v59 = vpop.f32.mrf.mxu0 }
 0x236   :  { %v2389_v60 = vadd.f32 %v1772_v58, %v329_v59  ;;  %1900 = vmatmul.mubr.msk.bf16.vlgmr.msra.gmra.mxu1 %vm441_vm2, %v345_v57  ;;  %v679_v16 = vsel %vm677_vm3, %v373_v11, 0 }
 0x237   :  { %v1896_v61 = vpop.f32.mrf.mxu0  ;;  %1911 = vmatprep.mubr.msk.bf16.mxu1 %vm2195_vm1, %v2194_v15 }
 0x298   :  { %v337_v62 = vpop.permute.xlu1 %336 }
 0x299   :  { %v346_v12 = vpack.c.bf16 %v337_v62, %v337_v62 }
 0x29e   :  { %v354_v63 = vpop.permute.xlu1 %353  ;;  %v351_v2 = vpop.permute.xlu0 %350 }
 0x29f   :  { %v361_v3 = vpack.c.bf16 %v354_v63, %v354_v63  ;;  %v360_v4 = vpack.c.bf16 %v351_v2, %v351_v2 }
 0x2a1   :  { %v538_v6 = vsel %vm441_vm2, %v361_v3, 0  ;;  %v492_v7 = vsel %vm441_vm2, %v360_v4, 0  ;;  %v334_v3 = vmul.f32 0.35355338, %v2371_v44 }
 0x2a2   :  { %v357_v8 = vpop.permute.xlu1 %356  ;;  %1904 = vmatpush3.bf16.xpose.msra.mxu0 %v492_v7  ;;  %1910 = vmatpush3.bf16.xpose.msra.mxu1 %v538_v6  ;;  %v340_v9 = vpop.permute.xlu0 %339 }
 0x2a3   :  { %1915 = vmatprep.subr.bf16.mxu0 %v2194_v15  ;;  %1921 = vmatprep.subr.bf16.mxu1 %v2194_v15  ;;  %v362_v10 = vpack.c.bf16 %v357_v8, %v357_v8  ;;  %v347_v13 = vpack.c.bf16 %v340_v9, %v340_v9 }
 0x2a5   :  { %v584_v14 = vsel %vm441_vm2, %v362_v10, 0 }
 0x2a6   :  { %v343_v17 = vpop.permute.xlu1 %342 }
 0x2a7   :  { %v348_v18 = vpack.c.bf16 %v343_v17, %v343_v17 }
 0x2a9   :  { %1906 = vmatmul.mubr.msk.bf16.vlgmr.msra.gmra.mxu0 %vm441_vm2, %v346_v12  ;;  %1912 = vmatmul.mubr.msk.bf16.vlgmr.msra.gmra.mxu1 %vm441_vm2, %v347_v13 }
 0x2aa   :  { %1916 = vmatpush3.bf16.xpose.msra.mxu0 %v584_v14  ;;  %1922 = vmatpush3.bf16.msra.mxu1 %v679_v16 }
 0x2ab   :  { %1917 = vmatprep.mubr.msk.bf16.mxu0 %vm2195_vm1, %v2194_v15  ;;  %1923 = vmatprep.mubr.msk.bf16.mxu1 %vm2195_vm1, %v2194_v15 }
 0x2ac   :  { %1927 = vmatprep.subr.bf16.mxu0 %v2194_v15  ;;  %1933 = vmatprep.subr.bf16.mxu1 %v2194_v15 }
 0x2b1   :  { %1918 = vmatmul.mubr.msk.bf16.vlgmr.msra.gmra.mxu0 %vm441_vm2, %v348_v18 }
 0x2b2   :  { %1929 = vmatprep.mubr.msk.bf16.mxu0 %vm2195_vm1, %v2194_v15 }
 0x2f6   :  { %v482_v20 = vpop.f32.mrf.mxu1 }
 0x2f7   :  { %v483_v21 = vadd.f32 %v482_v20, %v2418_v19 }
 0x2f8   :  { %v1901_v22 = vpop.f32.mrf.mxu1 }
 0x2f9   :  { %v626_v23 = vsel %vm441_vm2, %v483_v21, -inf }
 0x2fa   :  { %627 = vmax.xlane.f32.xlu0 %v626_v23  ;;  %v485_v24 = vpop.f32.mrf.mxu1 }
 0x2fb   :  { %v900_v24 = vpack.c.bf16 %v2379_v52, %v2379_v52 }
 0x2fc   :  { %v1902_v25 = vpop.f32.mrf.mxu1 }
 0x369   :  { %v528_v27 = vpop.f32.mrf.mxu0  ;;  %v574_v28 = vpop.f32.mrf.mxu1 }
 0x36a   :  { %v529_v29 = vadd.f32 %v2425_v26, %v528_v27  ;;  %v575_v30 = vadd.f32 %v574_v28, %v2418_v19 }
 0x36b   :  { %v1907_v31 = vpop.f32.mrf.mxu0  ;;  %v1913_v32 = vpop.f32.mrf.mxu1 }
 0x36c   :  { %v632_v33 = vsel %vm441_vm2, %v575_v30, -inf  ;;  %v629_v34 = vsel %vm441_vm2, %v529_v29, -inf }
 0x36d   :  { %633 = vmax.xlane.f32.xlu0 %v632_v33  ;;  %v577_v35 = vpop.f32.mrf.mxu1  ;;  %630 = vmax.xlane.f32.xlu1 %v629_v34  ;;  %v531_v36 = vpop.f32.mrf.mxu0  ;;  %v886_v33 = vpack.c.bf16 %v334_v3, %v334_v3 }
 0x36f   :  { %v1908_v37 = vpop.f32.mrf.mxu0  ;;  %v1914_v38 = vpop.f32.mrf.mxu1 }
 0x370   :  { %v914_v38 = vpack.c.bf16 %v2389_v60, %v2389_v60 }
 0x371   :  { %v620_v39 = vpop.f32.mrf.mxu0 }
 0x372   :  { %v621_v40 = vadd.f32 %v2425_v26, %v620_v39 }
 0x373   :  { %v1919_v41 = vpop.f32.mrf.mxu0 }
 0x374   :  { %v635_v42 = vsel %vm441_vm2, %v621_v40, -inf  ;;  %v1218_v41 = vsel %vm677_vm3, %v914_v38, 0 }
 0x375   :  { %636 = vmax.xlane.f32.xlu0 %v635_v42  ;;  %v623_v43 = vpop.f32.mrf.mxu0 }
 0x377   :  { %v1920_v45 = vpop.f32.mrf.mxu0 }
 0x383   :  { %v628_v46 = vpop.xlane.xlu0 %627 }
 0x384   :  { %v638_v47 = vsub.f32 %v483_v21, %v628_v46 }
 0x386   :  { %v642_v48 = vmul.f32 1.442695, %v638_v47 }
 0x388   :  { %2080 = vpow2.f32 %v642_v48 }
 0x395   :  { %v2081_v49 = vpop.eup %2080 }
 0x396   :  { %v650_v50 = vsel %vm441_vm2, %v2081_v49, 0.0 }
 0x397   :  { %651 = vadd.xlane.f32.xlu0 %v650_v50 }
 0x3f6   :  { %v634_v51 = vpop.xlane.xlu0 %633  ;;  %v631_v53 = vpop.xlane.xlu1 %630 }
 0x3f7   :  { %v640_v54 = vsub.f32 %v575_v30, %v634_v51  ;;  %v639_v55 = vsub.f32 %v529_v29, %v631_v53  ;;  %v986_v30 = vsel %vm441_vm2, %v900_v24, 0 }
 0x3f9   :  { %v646_v56 = vmul.f32 1.442695, %v640_v54  ;;  %v644_v57 = vmul.f32 1.442695, %v639_v55 }
 0x3fb   :  { %2082 = vpow2.f32 %v646_v56 }
 0x3fc   :  { %2084 = vpow2.f32 %v644_v57 }
 0x3fe   :  { %v637_v63 = vpop.xlane.xlu0 %636 }
 0x3ff   :  { %v641_v6 = vsub.f32 %v621_v40, %v637_v63 }
 0x408   :  { %v2083_v58 = vpop.eup %2082 }
 0x409   :  { %v2085_v59 = vpop.eup %2084  ;;  %v656_v61 = vsel %vm441_vm2, %v2083_v58, 0.0 }
 0x40a   :  { %v653_v62 = vsel %vm441_vm2, %v2085_v59, 0.0  ;;  %657 = vadd.xlane.f32.xlu0 %v656_v61 }
 0x40b   :  { %654 = vadd.xlane.f32.xlu1 %v653_v62 }
 0x41c   :  { %367 = vrot.lane.b32.xlu1 %v2394_v5, %s2197_s7 }
 0x420   :  { %370 = vrot.lane.b32.xlu1 %v2394_v5, %s2198_s28  ;;  %364 = vrot.lane.b32.xlu0 %v2394_v5, %s2196_s6  ;;  %v652_v2 = vpop.xlane.xlu0 %651  ;;  %v648_v5 = vmul.f32 1.442695, %v641_v6 }
 0x421   :  { %2086 = vrcp.f32 %v652_v2 }
 0x422   :  { %2088 = vpow2.f32 %v648_v5 }
 0x424   :  { %891 = vrot.lane.b32.xlu1 %v2379_v52, %s2196_s6  ;;  %894 = vrot.lane.b32.xlu0 %v2379_v52, %s2197_s7 }
 0x428   :  { %897 = vrot.lane.b32.xlu0 %v2379_v52, %s2198_s28 }
 0x42c   :  { %883 = vrot.lane.b32.xlu0 %v334_v3, %s2198_s28 }
 0x42e   :  { %v2087_v4 = vpop.eup %2086 }
 0x42f   :  { %v666_v7 = vmul.f32 %v2087_v4, %v2081_v49  ;;  %v2089_v9 = vpop.eup %2088 }
 0x430   :  { %v659_v10 = vsel %vm441_vm2, %v2089_v9, 0.0 }
 0x431   :  { %v670_v8 = vpack.c.bf16 %v666_v7, %v666_v7 }
 0x433   :  { %1924 = vmatmul.mubr.msk.bf16.vlgmr.msra.gmra.mxu1 %vm441_vm2, %v670_v8 }
 0x434   :  { %1935 = vmatprep.mubr.msk.bf16.mxu1 %vm2195_vm1, %v2194_v15 }
 0x448   :  { %660 = vadd.xlane.f32.xlu1 %v659_v10 }
 0x459   :  { %877 = vrot.lane.b32.xlu1 %v334_v3, %s2196_s6 }
 0x45d   :  { %880 = vrot.lane.b32.xlu1 %v334_v3, %s2197_s7 }
 0x493   :  { %v658_v44 = vpop.xlane.xlu0 %657 }
 0x494   :  { %v655_v11 = vpop.xlane.xlu1 %654  ;;  %2090 = vrcp.f32 %v658_v44 }
 0x495   :  { %2092 = vrcp.f32 %v655_v11 }
 0x497   :  { %v365_v12 = vpop.permute.xlu0 %364 }
 0x498   :  { %v368_v13 = vpop.permute.xlu1 %367  ;;  %v374_v14 = vpack.c.bf16 %v365_v12, %v365_v12 }
 0x499   :  { %v375_v16 = vpack.c.bf16 %v368_v13, %v368_v13 }
 0x49a   :  { %v725_v17 = vsel %vm677_vm3, %v374_v14, 0 }
 0x49b   :  { %v771_v18 = vsel %vm677_vm3, %v375_v16, 0  ;;  %1928 = vmatpush3.bf16.msra.mxu0 %v725_v17  ;;  %v895_v32 = vpop.permute.xlu0 %894 }
 0x49c   :  { %1934 = vmatpush3.bf16.msra.mxu1 %v771_v18  ;;  %1939 = vmatprep.subr.bf16.mxu0 %v2194_v15  ;;  %v371_v20 = vpop.permute.xlu1 %370  ;;  %v902_v52 = vpack.c.bf16 %v895_v32, %v895_v32 }
 0x49d   :  { %1945 = vmatprep.subr.bf16.mxu1 %v2194_v15  ;;  %v376_v25 = vpack.c.bf16 %v371_v20, %v371_v20 }
 0x49e   :  { %v1078_v34 = vsel %vm441_vm2, %v902_v52, 0 }
 0x49f   :  { %v817_v31 = vsel %vm677_vm3, %v376_v25, 0  ;;  %v898_v48 = vpop.permute.xlu0 %897 }
 0x4a0   :  { %v892_v35 = vpop.permute.xlu1 %891  ;;  %v903_v49 = vpack.c.bf16 %v898_v48, %v898_v48 }
 0x4a1   :  { %v2091_v21 = vpop.eup %2090  ;;  %v901_v43 = vpack.c.bf16 %v892_v35, %v892_v35 }
 0x4a2   :  { %v2093_v22 = vpop.eup %2092  ;;  %v668_v23 = vmul.f32 %v2091_v21, %v2083_v58  ;;  %v1124_v51 = vsel %vm441_vm2, %v903_v49, 0 }
 0x4a3   :  { %v667_v27 = vmul.f32 %v2093_v22, %v2085_v59  ;;  %v1032_v47 = vsel %vm441_vm2, %v901_v43, 0  ;;  %v884_v53 = vpop.permute.xlu0 %883 }
 0x4a4   :  { %v672_v28 = vpack.c.bf16 %v668_v23, %v668_v23  ;;  %v889_v54 = vpack.c.bf16 %v884_v53, %v884_v53 }
 0x4a5   :  { %v671_v29 = vpack.c.bf16 %v667_v27, %v667_v27 }
 0x4a6   :  { %1936 = vmatmul.mubr.msk.bf16.vlgmr.msra.gmra.mxu1 %vm441_vm2, %v672_v28 }
 0x4a7   :  { %1930 = vmatmul.mubr.msk.bf16.vlgmr.msra.gmra.mxu0 %vm441_vm2, %v671_v29  ;;  %1946 = vmatpush3.bf16.xpose.msra.mxu1 %v986_v30 }
 0x4a8   :  { %1940 = vmatpush3.bf16.msra.mxu0 %v817_v31  ;;  %1947 = vmatprep.mubr.msk.bf16.mxu1 %vm2195_vm1, %v2194_v15 }
 0x4a9   :  { %1957 = vmatprep.subr.bf16.mxu1 %v2194_v15  ;;  %1941 = vmatprep.mubr.msk.bf16.mxu0 %vm2195_vm1, %v2194_v15 }
 0x4aa   :  { %1951 = vmatprep.subr.bf16.mxu0 %v2194_v15 }
 0x4ae   :  { %1948 = vmatmul.mubr.msk.bf16.vlgmr.msra.gmra.mxu1 %vm441_vm2, %v886_v33 }
 0x4af   :  { %1958 = vmatpush3.bf16.xpose.msra.mxu1 %v1078_v34  ;;  %1959 = vmatprep.mubr.msk.bf16.mxu1 %vm2195_vm1, %v2194_v15 }
 0x4b0   :  { %1969 = vmatprep.subr.bf16.mxu1 %v2194_v15 }
 0x4d1   :  { %v661_v36 = vpop.xlane.xlu1 %660 }
 0x4d2   :  { %2094 = vrcp.f32 %v661_v36 }
 0x4d5   :  { %v878_v37 = vpop.permute.xlu1 %877 }
 0x4d6   :  { %v887_v50 = vpack.c.bf16 %v878_v37, %v878_v37 }
 0x4d9   :  { %v881_v39 = vpop.permute.xlu1 %880 }
 0x4da   :  { %v888_v40 = vpack.c.bf16 %v881_v39, %v881_v39 }
 0x4dc   :  { %1960 = vmatmul.mubr.msk.bf16.vlgmr.msra.gmra.mxu1 %vm441_vm2, %v888_v40 }
 0x4dd   :  { %1970 = vmatpush3.bf16.msra.mxu1 %v1218_v41  ;;  %1971 = vmatprep.mubr.msk.bf16.mxu1 %vm2195_vm1, %v2194_v15 }
 0x4de   :  { %1981 = vmatprep.subr.bf16.mxu1 %v2194_v15 }
 0x4df   :  { %v2095_v42 = vpop.eup %2094 }
 0x4e0   :  { %v669_v45 = vmul.f32 %v2095_v42, %v2089_v9 }
 0x4e2   :  { %v673_v46 = vpack.c.bf16 %v669_v45, %v669_v45 }
 0x4e4   :  { %1942 = vmatmul.mubr.msk.bf16.vlgmr.msra.gmra.mxu0 %vm441_vm2, %v673_v46 }
 0x4e5   :  { %1952 = vmatpush3.bf16.xpose.msra.mxu0 %v1032_v47  ;;  %1953 = vmatprep.mubr.msk.bf16.mxu0 %vm2195_vm1, %v2194_v15 }
 0x4e6   :  { %1963 = vmatprep.subr.bf16.mxu0 %v2194_v15 }
 0x4ec   :  { %1954 = vmatmul.mubr.msk.bf16.vlgmr.msra.gmra.mxu0 %vm441_vm2, %v887_v50 }
 0x4ed   :  { %1964 = vmatpush3.bf16.xpose.msra.mxu0 %v1124_v51  ;;  %1965 = vmatprep.mubr.msk.bf16.mxu0 %vm2195_vm1, %v2194_v15 }
 0x4ee   :  { %1975 = vmatprep.subr.bf16.mxu0 %v2194_v15 }
 0x4f3   :  { %v2494_v55 = vpop.f32.mrf.mxu1 }
 0x4f4   :  { %1966 = vmatmul.mubr.msk.bf16.vlgmr.msra.gmra.mxu0 %vm441_vm2, %v889_v54 }
 0x4f5   :  { %v1925_v56 = vpop.f32.mrf.mxu1  ;;  %1977 = vmatprep.mubr.msk.bf16.mxu0 %vm2195_vm1, %v2194_v15 }
 0x4f7   :  { %v718_v57 = vpop.f32.mrf.mxu1 }
 0x4f9   :  { %v1926_v58 = vpop.f32.mrf.mxu1 }
 0x566   :  { %v2499_v59 = vpop.f32.mrf.mxu1 }
 0x567   :  { %v2501_v61 = vpop.f32.mrf.mxu0 }
 0x568   :  { %v1937_v62 = vpop.f32.mrf.mxu1 }
 0x569   :  { %v1931_v63 = vpop.f32.mrf.mxu0 }
 0x56a   :  { %v810_v2 = vpop.f32.mrf.mxu1 }
 0x56b   :  { %v764_v3 = vpop.f32.mrf.mxu0 }
 0x56c   :  { %v1938_v4 = vpop.f32.mrf.mxu1 }
 0x56d   :  { %v1932_v6 = vpop.f32.mrf.mxu0 }
 0x56e   :  { %v1022_v7 = vpop.f32.mrf.mxu1 }
 0x56f   :  { %v1023_v8 = vadd.f32 %v1022_v7, %v2418_v19 }
 0x570   :  { %v1949_v5 = vpop.f32.mrf.mxu1 }
 0x571   :  { %v1166_v9 = vsel %vm441_vm2, %v1023_v8, -inf }
 0x572   :  { %1167 = vmax.xlane.f32.xlu1 %v1166_v9  ;;  %v1025_v10 = vpop.f32.mrf.mxu1 }
 0x574   :  { %v1950_v44 = vpop.f32.mrf.mxu1 }
 0x583   :  { %905 = vrot.lane.b32.xlu1 %v2389_v60, %s2196_s6 }
 0x59c   :  { %v1114_v11 = vpop.f32.mrf.mxu1 }
 0x59d   :  { %v1115_v24 = vadd.f32 %v1114_v11, %v2418_v19 }
 0x59e   :  { %v1961_v12 = vpop.f32.mrf.mxu1 }
 0x59f   :  { %v1172_v29 = vsel %vm441_vm2, %v1115_v24, -inf }
 0x5a0   :  { %v1117_v13 = vpop.f32.mrf.mxu1 }
 0x5a2   :  { %v1962_v14 = vpop.f32.mrf.mxu1 }
 0x5a4   :  { %v2507_v16 = vpop.f32.mrf.mxu0 }
 0x5a6   :  { %v1943_v17 = vpop.f32.mrf.mxu0 }
 0x5a8   :  { %v856_v18 = vpop.f32.mrf.mxu0 }
 0x5aa   :  { %v1944_v20 = vpop.f32.mrf.mxu0 }
 0x5ac   :  { %v1068_v21 = vpop.f32.mrf.mxu0 }
 0x5ad   :  { %v1069_v22 = vadd.f32 %v2425_v26, %v1068_v21 }
 0x5ae   :  { %v1955_v23 = vpop.f32.mrf.mxu0 }
 0x5af   :  { %v1169_v25 = vsel %vm441_vm2, %v1069_v22, -inf }
 0x5b0   :  { %1170 = vmax.xlane.f32.xlu0 %v1169_v25  ;;  %v1071_v27 = vpop.f32.mrf.mxu0 }
 0x5b2   :  { %v1956_v28 = vpop.f32.mrf.mxu0 }
 0x5b3   :  { %v2064_v28 = vld [vmem:[#allocation2 + $0x8] sm:$0xff]  }
 0x5b4   :  { %1173 = vmax.xlane.f32.xlu0 %v1172_v29  ;;  %v1160_v30 = vpop.f32.mrf.mxu0  ;;  %v2065_v29 = vld [vmem:[#allocation2] sm:$0xff]  }
 0x5b5   :  { %v1161_v31 = vadd.f32 %v2425_v26, %v1160_v30 }
 0x5b6   :  { %v1967_v32 = vpop.f32.mrf.mxu0 }
 0x5b7   :  { %v1175_v52 = vsel %vm441_vm2, %v1161_v31, -inf }
 0x5b8   :  { %1176 = vmax.xlane.f32.xlu0 %v1175_v52  ;;  %v1163_v33 = vpop.f32.mrf.mxu0 }
 0x5ba   :  { %v1968_v34 = vpop.f32.mrf.mxu0 }
 0x5fb   :  { %v1168_v35 = vpop.xlane.xlu1 %1167 }
 0x5fc   :  { %v1178_v36 = vsub.f32 %v1023_v8, %v1168_v35 }
 0x5fe   :  { %v1182_v19 = vmul.f32 1.442695, %v1178_v36 }
 0x5ff   :  { %v906_v37 = vpop.permute.xlu1 %905 }
 0x600   :  { %2096 = vpow2.f32 %v1182_v19  ;;  %v915_v38 = vpack.c.bf16 %v906_v37, %v906_v37 }
 0x602   :  { %v1264_v39 = vsel %vm677_vm3, %v915_v38, 0 }
 0x603   :  { %1976 = vmatpush3.bf16.msra.mxu0 %v1264_v39 }
 0x604   :  { %1987 = vmatprep.subr.bf16.mxu0 %v2194_v15 }
 0x60d   :  { %v2097_v40 = vpop.eup %2096 }
 0x60e   :  { %v1190_v26 = vsel %vm441_vm2, %v2097_v40, 0.0 }
 0x60f   :  { %1191 = vadd.xlane.f32.xlu1 %v1190_v26 }
 0x639   :  { %v1171_v41 = vpop.xlane.xlu0 %1170 }
 0x63a   :  { %v1179_v42 = vsub.f32 %v1069_v22, %v1171_v41 }
 0x63c   :  { %v1184_v43 = vmul.f32 1.442695, %v1179_v42 }
 0x63d   :  { %v1174_v45 = vpop.xlane.xlu0 %1173 }
 0x63e   :  { %2098 = vpow2.f32 %v1184_v43  ;;  %v1180_v46 = vsub.f32 %v1115_v24, %v1174_v45 }
 0x640   :  { %v1186_v47 = vmul.f32 1.442695, %v1180_v46 }
 0x641   :  { %v1177_v48 = vpop.xlane.xlu0 %1176 }
 0x642   :  { %2100 = vpow2.f32 %v1186_v47  ;;  %v1181_v49 = vsub.f32 %v1161_v31, %v1177_v48 }
 0x644   :  { %v1188_v50 = vmul.f32 1.442695, %v1181_v49 }
 0x646   :  { %2102 = vpow2.f32 %v1188_v50 }
 0x64b   :  { %v2099_v51 = vpop.eup %2098 }
 0x64c   :  { %v1193_v53 = vsel %vm441_vm2, %v2099_v51, 0.0 }
 0x64d   :  { %1194 = vadd.xlane.f32.xlu0 %v1193_v53 }
 0x64f   :  { %v2101_v54 = vpop.eup %2100 }
 0x650   :  { %v1196_v56 = vsel %vm441_vm2, %v2101_v54, 0.0 }
 0x651   :  { %1197 = vadd.xlane.f32.xlu1 %v1196_v56 }
 0x653   :  { %v2103_v57 = vpop.eup %2102 }
 0x654   :  { %v1199_v58 = vsel %vm441_vm2, %v2103_v57, 0.0 }
 0x655   :  { %1200 = vadd.xlane.f32.xlu0 %v1199_v58  ;;  %v1796_v58 = vld [vmem:[%s2634_s11] ss:$0 sm:$0xff] }
 0x662   :  { %911 = vrot.lane.b32.xlu1 %v2389_v60, %s2198_s28 }
 0x66b   :  { %908 = vrot.lane.b32.xlu0 %v2389_v60, %s2197_s7 }
 0x698   :  { %v1192_v62 = vpop.xlane.xlu1 %1191 }
 0x699   :  { %2104 = vrcp.f32 %v1192_v62 }
 0x6a6   :  { %v2105_v63 = vpop.eup %2104 }
 0x6a7   :  { %v1206_v2 = vmul.f32 %v2105_v63, %v2097_v40 }
 0x6a9   :  { %v1210_v3 = vpack.c.bf16 %v1206_v2, %v1206_v2 }
 0x6ab   :  { %1972 = vmatmul.mubr.msk.bf16.vlgmr.msra.gmra.mxu1 %vm441_vm2, %v1210_v3 }
 0x6ac   :  { %1983 = vmatprep.mubr.msk.bf16.mxu1 %vm2195_vm1, %v2194_v15 }
 0x6d6   :  { %v1195_v4 = vpop.xlane.xlu0 %1194 }
 0x6d7   :  { %2106 = vrcp.f32 %v1195_v4 }
 0x6da   :  { %v1198_v6 = vpop.xlane.xlu1 %1197 }
 0x6db   :  { %2108 = vrcp.f32 %v1198_v6 }
 0x6de   :  { %v1201_v7 = vpop.xlane.xlu0 %1200  ;;  %v912_v8 = vpop.permute.xlu1 %911 }
 0x6df   :  { %2110 = vrcp.f32 %v1201_v7  ;;  %v917_v10 = vpack.c.bf16 %v912_v8, %v912_v8 }
 0x6e1   :  { %v1356_v14 = vsel %vm677_vm3, %v917_v10, 0 }
 0x6e2   :  { %v909_v5 = vpop.permute.xlu0 %908 }
 0x6e3   :  { %v916_v9 = vpack.c.bf16 %v909_v5, %v909_v5 }
 0x6e4   :  { %v2107_v60 = vpop.eup %2106 }
 0x6e5   :  { %v1310_v44 = vsel %vm677_vm3, %v916_v9, 0  ;;  %v1207_v11 = vmul.f32 %v2107_v60, %v2099_v51 }
 0x6e6   :  { %1982 = vmatpush3.bf16.msra.mxu1 %v1310_v44 }
 0x6e7   :  { %v1211_v12 = vpack.c.bf16 %v1207_v11, %v1207_v11  ;;  %1993 = vmatprep.subr.bf16.mxu1 %v2194_v15 }
 0x6e8   :  { %v2109_v13 = vpop.eup %2108 }
 0x6e9   :  { %1978 = vmatmul.mubr.msk.bf16.vlgmr.msra.gmra.mxu0 %vm441_vm2, %v1211_v12  ;;  %v1208_v17 = vmul.f32 %v2109_v13, %v2101_v54 }
 0x6ea   :  { %1988 = vmatpush3.bf16.msra.mxu0 %v1356_v14  ;;  %1989 = vmatprep.mubr.msk.bf16.mxu0 %vm2195_vm1, %v2194_v15 }
 0x6eb   :  { %v1212_v18 = vpack.c.bf16 %v1208_v17, %v1208_v17  ;;  %2001 = vmatprep.subr.bf16.mxu0 %v2194_v15  ;;  %v2066_v17 = vld [vmem:[#allocation5 + $0x8] sm:$0xff]  }
 0x6ec   :  { %v2111_v20 = vpop.eup %2110 }
 0x6ed   :  { %1984 = vmatmul.mubr.msk.bf16.vlgmr.msra.gmra.mxu1 %vm441_vm2, %v1212_v18  ;;  %v1209_v21 = vmul.f32 %v2111_v20, %v2103_v57  ;;  %v2067_v18 = vld [vmem:[#allocation5] sm:$0xff]  }
 0x6ee   :  { %1997 = vmatprep.mubr.msk.bf16.mxu1 %vm2195_vm1, %v2194_v15  ;;  %1994 = vmatpush3.bf16.msra.mxu1 %v2064_v28 }
 0x6ef   :  { %v1213_v22 = vpack.c.bf16 %v1209_v21, %v1209_v21  ;;  %1995 = vmatprep.subr.bf16.mxu1 %v2194_v15 }
 0x6f1   :  { %1990 = vmatmul.mubr.msk.bf16.vlgmr.msra.gmra.mxu0 %vm441_vm2, %v1213_v22 }
 0x6f2   :  { %2005 = vmatprep.mubr.msk.bf16.mxu0 %vm2195_vm1, %v2194_v15  ;;  %1996 = vmatpush3.bf16.msra.mxu1 %v2065_v29  ;;  %v1800_v29 = vld [vmem:[%s2635_s12] ss:$0 sm:$0xff] }
 0x6f3   :  { %2009 = vmatprep.subr.bf16.mxu1 %v2194_v15  ;;  %2002 = vmatpush3.bf16.msra.mxu0 %v2066_v17 }
 0x6f4   :  { %2003 = vmatprep.subr.bf16.mxu0 %v2194_v15 }
 0x6f7   :  { %2004 = vmatpush3.bf16.msra.mxu0 %v2067_v18 }
 0x76b   :  { %v1254_v23 = vpop.f32.mrf.mxu1 }
 0x76d   :  { %v1973_v24 = vpop.f32.mrf.mxu1 }
 0x76f   :  { %v1257_v25 = vpop.f32.mrf.mxu1 }
 0x771   :  { %v1974_v27 = vpop.f32.mrf.mxu1 }
 0x7a9   :  { %v1300_v30 = vpop.f32.mrf.mxu0 }
 0x7aa   :  { %v2043_v31 = vpack.i.bf16 %v1300_v30, %v2501_v61 }
 0x7ab   :  { %v1979_v32 = vpop.f32.mrf.mxu0 }
 0x7ac   :  { %2044 = vrot.lane.b32.xlu1 %v2043_v31, %s2199_s1 }
 0x7ad   :  { %v1303_v52 = vpop.f32.mrf.mxu0  ;;  %v1346_v33 = vpop.f32.mrf.mxu1 }
 0x7ae   :  { %v2048_v34 = vpack.i.bf16 %v1346_v33, %v2499_v59  ;;  %v1801_v52 = vld [vmem:[%s2636_s13] ss:$0 sm:$0xff] }
 0x7af   :  { %v1980_v35 = vpop.f32.mrf.mxu0  ;;  %v1985_v36 = vpop.f32.mrf.mxu1 }
 0x7b0   :  { %2049 = vrot.lane.b32.xlu1 %v2048_v34, %s2200_s20  ;;  %s2202_s20 = smov [#allocation7]  }
 0x7b1   :  { %v1349_v19 = vpop.f32.mrf.mxu1  ;;  %v1392_v37 = vpop.f32.mrf.mxu0 }
 0x7b2   :  { %v2053_v38 = vpack.i.bf16 %v1392_v37, %v2507_v16  ;;  %v2068_v19 = vld [vmem:[%s2639_s16 + $0x38] sm:$0xff]   ;;  %v2069_v37 = vld [vmem:[%s2639_s16 + $0x30] sm:$0xff]  }
 0x7b3   :  { %v1986_v61 = vpop.f32.mrf.mxu1  ;;  %v1991_v39 = vpop.f32.mrf.mxu0 }
 0x7b4   :  { %2054 = vrot.lane.b32.xlu0 %v2053_v38, %s2201_s21  ;;  %v2070_v38 = vld [vmem:[%s2639_s16 + $0x28] sm:$0xff]   ;;  %v2071_v61 = vld [vmem:[%s2639_s16 + $0x20] sm:$0xff]   ;;  %v2072_v39 = vld [vmem:[%s2639_s16 + $0x18] sm:$0xff]   ;;  %s1733_s21 = sshll.u32 %s2202_s20, 4  ;;  %s1734_s21 = int_to_ptr.vmem [resolvable:$true] %s1733_s21 }
 0x7b5   :  { %v1395_v40 = vpop.f32.mrf.mxu0  ;;  %s2164_s22 = scalar_lea.vmem %s1734_s21, 256  ;;  %p2169_p11 = scmp.lt.s32.totalorder %s1734_s21, %s1734_s21 }
 0x7b6   :  { %v2073_v40 = vld [vmem:[%s2639_s16 + $0x10] sm:$0xff]   ;;  %p2165_p10 = scmp.ne.s32.totalorder %s1734_s21, %s2164_s22  ;;  %p2170_p12 = scmp.lt.s32.totalorder %s2164_s22, %s2164_s22 }
 0x7b7   :  { %v1992_v26 = vpop.f32.mrf.mxu0 }
 0x7b8   :  { %v2074_v26 = vld [vmem:[%s2639_s16 + $0x8] sm:$0xff]   ;;  %p2171_p13 = por %p2170_p12, %p2169_p11 }
 0x7ba   :  { %p2172_p0 = pnand %p2171_p13, %p2165_p10 }
 0x81e   :  { %v2045_v41 = vpop.permute.xlu1 %2044 }
 0x81f   :  { %v2047_v43 = vunpack.i.h.bf16 %v2045_v41  ;;  %v2046_v45 = vunpack.i.l.bf16 %v2045_v41  ;;  %v2075_v41 = vld [vmem:[%s2639_s16] sm:$0xff]  }
 0x821   :  { %v1410_v48 = vsel %vm441_vm2, %v1254_v23, %v2047_v43  ;;  %v871_v16 = vsel %vm441_vm2, %v2494_v55, %v2046_v45 }
 0x822   :  { %v2050_v42 = vpop.permute.xlu1 %2049 }
 0x823   :  { %v2052_v46 = vunpack.i.h.bf16 %v2050_v42  ;;  %v2051_v59 = vunpack.i.l.bf16 %v2050_v42  ;;  %v1802_v42 = vld [vmem:[%s2638_s15] ss:$0 sm:$0xff] }
 0x825   :  { %v873_v51 = vsel %vm872_vm4, %v871_v16, %v2051_v59  ;;  %v1411_v53 = vsel %vm872_vm4, %v1410_v48, %v2052_v46 }
 0x826   :  { %v2055_v47 = vpop.permute.xlu0 %2054 }
 0x827   :  { %v2057_v49 = vunpack.i.h.bf16 %v2055_v47  ;;  %v2056_v50 = vunpack.i.l.bf16 %v2055_v47 }
 0x829   :  { %v1412_v54 = vsel %vm874_vm5, %v1411_v53, %v2057_v49  ;;  %v875_v56 = vsel %vm874_vm5, %v873_v51, %v2056_v50 }
 0x82a   :  { %v1413_v57 = vpack.c.bf16 %v1412_v54, %v875_v56 }
 0x82c   :  { %1998 = vmatmul.mubr.msk.bf16.vlgmr.msra.gmra.mxu1 %vm93_vm0, %v1413_v57 }
 0x82d   :  { %2025 = vmatprep.mubr.msk.bf16.mxu1 %vm2195_vm1, %v2194_v15  ;;  %2010 = vmatpush3.bf16.msra.mxu1 %v2068_v19 }
 0x82e   :  { %2011 = vmatprep.subr.bf16.mxu1 %v2194_v15 }
 0x831   :  { %2012 = vmatpush3.bf16.msra.mxu1 %v2069_v37 }
 0x832   :  { %2013 = vmatprep.subr.bf16.mxu1 %v2194_v15 }
 0x835   :  { %2014 = vmatpush3.bf16.msra.mxu1 %v2070_v38 }
 0x836   :  { %2015 = vmatprep.subr.bf16.mxu1 %v2194_v15 }
 0x839   :  { %2016 = vmatpush3.bf16.msra.mxu1 %v2071_v61 }
 0x83a   :  { %2017 = vmatprep.subr.bf16.mxu1 %v2194_v15 }
 0x83d   :  { %2018 = vmatpush3.bf16.msra.mxu1 %v2072_v39 }
 0x83e   :  { %2019 = vmatprep.subr.bf16.mxu1 %v2194_v15 }
 0x841   :  { %2020 = vmatpush3.bf16.msra.mxu1 %v2073_v40 }
 0x842   :  { %2021 = vmatprep.subr.bf16.mxu1 %v2194_v15 }
 0x845   :  { %2022 = vmatpush3.bf16.msra.mxu1 %v2074_v26 }
 0x846   :  { %2023 = vmatprep.subr.bf16.mxu1 %v2194_v15 }
 0x849   :  { %2024 = vmatpush3.bf16.msra.mxu1 %v2075_v41 }
 0x8ec   :  { %v1474_v62 = vpop.f32.mrf.mxu1 }
 0x8ed   :  { %v1475_v63 = vadd.f32 %v1796_v58, %v1474_v62 }
 0x8ee   :  { %v1999_v2 = vpop.f32.mrf.mxu1 }
 0x8ef   :  { %v2557_v55 = vadd.f32 %v1475_v63, %v2308_v0 }
 0x8f0   :  { %v1477_v3 = vpop.f32.mrf.mxu1 }
 0x8f1   :  { %v1478_v4 = vadd.f32 %v1796_v58, %v1477_v3  ;;  %v1485_v6 = vsel %vm93_vm0, %v2557_v55, 0.0  ;;  %v1808_v3 = vld [vmem:[%s2640_s17] ss:$0 sm:$0xff] }
 0x8f2   :  { %1486 = vadd.xlane.f32.xlu1 %v1485_v6  ;;  %v2000_v7 = vpop.f32.mrf.mxu1 }
 0x8f3   :  { %v2562_v8 = vadd.f32 %v1478_v4, %v2313_v1 }
 0x8f5   :  { %v1488_v5 = vsel %vm93_vm0, %v2562_v8, 0.0 }
 0x8f6   :  { %1489 = vadd.xlane.f32.xlu0 %v1488_v5 }
 0x97b   :  { %v1487_v9 = vpop.xlane.xlu1 %1486 }
 0x97c   :  { %v1491_v60 = vmul.f32 0.03125, %v1487_v9 }
 0x97e   :  { %v1493_v10 = vsub.f32 %v2557_v55, %v1491_v60 }
 0x97f   :  { %v1490_v0 = vpop.xlane.xlu0 %1489 }
 0x980   :  { %v1492_v44 = vmul.f32 0.03125, %v1490_v0  ;;  %v1495_v11 = vmul.f32 %v1493_v10, %v1493_v10 }
 0x982   :  { %v1494_v12 = vsub.f32 %v2562_v8, %v1492_v44  ;;  %v1497_v13 = vsel %vm93_vm0, %v1495_v11, 0.0 }
 0x983   :  { %1498 = vadd.xlane.f32.xlu0 %v1497_v13 }
 0x984   :  { %v1496_v14 = vmul.f32 %v1494_v12, %v1494_v12 }
 0x986   :  { %v1500_v1 = vsel %vm93_vm0, %v1496_v14, 0.0 }
 0x987   :  { %1501 = vadd.xlane.f32.xlu0 %v1500_v1 }
 0xa0c   :  { %v1499_v20 = vpop.xlane.xlu0 %1498 }
 0xa0d   :  { %v1503_v21 = vmul.f32 0.03125, %v1499_v20 }
 0xa0f   :  { %v1505_v22 = vadd.f32 1e-05, %v1503_v21 }
 0xa10   :  { %v1502_v23 = vpop.xlane.xlu0 %1501 }
 0xa11   :  { %2112 = vrsqrt.f32 %v1505_v22  ;;  %v1504_v24 = vmul.f32 0.03125, %v1502_v23 }
 0xa13   :  { %v1506_v25 = vadd.f32 1e-05, %v1504_v24 }
 0xa15   :  { %2114 = vrsqrt.f32 %v1506_v25 }
 0xa1e   :  { %v2113_v27 = vpop.eup %2112 }
 0xa1f   :  { %v1509_v28 = vmul.f32 %v2113_v27, %v1493_v10 }
 0xa21   :  { %v1517_v32 = vmul.f32 %v1800_v29, %v1509_v28 }
 0xa22   :  { %v2115_v30 = vpop.eup %2114 }
 0xa23   :  { %v1510_v31 = vmul.f32 %v2115_v30, %v1494_v12  ;;  %v1525_v34 = vadd.f32 %v1801_v52, %v1517_v32 }
 0xa25   :  { %v1518_v33 = vmul.f32 %v1800_v29, %v1510_v31 }
 0xa27   :  { %v1526_v35 = vadd.f32 %v1801_v52, %v1518_v33 }
 0xa29   :  { %v1527_v36 = vpack.c.bf16 %v1526_v35, %v1525_v34 }
 0xa2b   :  { %2006 = vmatmul.mubr.msk.bf16.vlgmr.msra.gmra.mxu0 %vm93_vm0, %v1527_v36 }
 0xaeb   :  { %v1588_v43 = vpop.f32.mrf.mxu0 }
 0xaec   :  { %v1589_v45 = vadd.f32 %v1802_v42, %v1588_v43 }
 0xaed   :  { %v2007_v46 = vpop.f32.mrf.mxu0 }
 0xaee   :  { %v1806_v59 = vmul.f32 -1.702, %v1589_v45 }
 0xaef   :  { %v1591_v47 = vpop.f32.mrf.mxu0 }
 0xaf0   :  { %v1599_v48 = vmul.f32 1.442695, %v1806_v59  ;;  %v1592_v16 = vadd.f32 %v1802_v42, %v1591_v47 }
 0xaf1   :  { %v2008_v49 = vpop.f32.mrf.mxu0 }
 0xaf2   :  { %2116 = vpow2.f32 %v1599_v48  ;;  %v1807_v50 = vmul.f32 -1.702, %v1592_v16 }
 0xaf4   :  { %v1601_v15 = vmul.f32 1.442695, %v1807_v50 }
 0xaf6   :  { %2118 = vpow2.f32 %v1601_v15 }
 0xaff   :  { %v2117_v51 = vpop.eup %2116 }
 0xb00   :  { %v1603_v53 = vadd.f32 1.0, %v2117_v51 }
 0xb02   :  { %2120 = vrcp.f32 %v1603_v53 }
 0xb03   :  { %v2119_v54 = vpop.eup %2118 }
 0xb04   :  { %v1604_v56 = vadd.f32 1.0, %v2119_v54 }
 0xb06   :  { %2122 = vrcp.f32 %v1604_v56 }
 0xb0f   :  { %v2121_v57 = vpop.eup %2120 }
 0xb10   :  { %v1609_v62 = vmul.f32 %v2121_v57, %v1589_v45 }
 0xb13   :  { %v2123_v58 = vpop.eup %2122 }
 0xb14   :  { %v1610_v63 = vmul.f32 %v2123_v58, %v1592_v16 }
 0xb16   :  { %v1611_v2 = vpack.c.bf16 %v1610_v63, %v1609_v62 }
 0xb18   :  { %2026 = vmatmul.mubr.bf16.vlgmr.msra.gmra.mxu1 %v1611_v2 }
 0xbd8   :  { %v1717_v4 = vpop.f32.mrf.mxu1 }
 0xbd9   :  { %v1718_v6 = vadd.f32 %v1808_v3, %v1717_v4 }
 0xbda   :  { %v2027_v7 = vpop.f32.mrf.mxu1 }
 0xbdb   :  { %v1724_v5 = vadd.f32 %v1718_v6, %v2557_v55 }
 0xbdc   :  { %v1720_v9 = vpop.f32.mrf.mxu1 }
 0xbdd   :  { %1726 = vst.msk [vmem:[#allocation7] sm:$0xff] %vm93_vm0, %v1724_v5  ;;  %v1721_v60 = vadd.f32 %v1808_v3, %v1720_v9 }
 0xbde   :  { %v2028_v10 = vpop.f32.mrf.mxu1 }
 0xbdf   :  { %v1725_v0 = vadd.f32 %v1721_v60, %v2562_v8 }
 0xbe1   :  { %1727 = vst.msk [vmem:[#allocation7 + $0x8] sm:$0xff] %vm93_vm0, %v1725_v0 }
 0xbe2   :  { %2175 = shalt.err (!%p2172_p0)
}
 0xbe3   :  { %s2203_s17 = smov 128  }
 0xbe4   :  { %1739 = dma.vmem_to_hbm [thread:$0]  %s1734_s21, 256, %s2641_s18, [#allocation4], %s2203_s17, %s2203_s17, %s2199_s1  }
 0xbe5   :  { %2188 = dma.done.wait [#allocation4], 256  }
 0xbe6   :  { %2189 = vsyncadd [#allocation4], 4294967040 }
 0xbe7   :  { %1743 = vsyncpa [#allocation3], 1 }
 0xbe8   :  { %1744 = vsyncpa [#allocation6], 1 }
 0xbe9   :  { %1745 = vsyncpa [#allocation4], 1 }

</bundles_post_ra>
